<compile_context>
chip_gen: v7x
topology: tpu7x:2x2x1
jax: 0.10.0
libtpu: 0.0.40
codegen_flags: <defaults>
</compile_context>

<pallas_src>
import numpy as np
import jax
import jax.numpy as jnp
from jax.experimental import pallas as pl
from jax.experimental.pallas import tpu as pltpu  # noqa: F401  (available if needed)

# ----- model hyper-parameters (small, consistent with the module) -----
B = 2          # batch
N = 8          # sequence length
DIM = 32       # model dim
DEPTH = 2      # number of layers
HEADS = 4
DIM_HEAD = 8
MLP_DIM = 64
ELO_DIM = 16
INNER = HEADS * DIM_HEAD       # 32
EPS = 1e-5                     # PyTorch LayerNorm default eps
SCALE = DIM_HEAD ** (-0.5)
VEC_W = 64                     # packed-vector row width (>= MLP_DIM)

INV_SQRT2 = float(1.0 / np.sqrt(2.0))
# 0.5 * y * (1 + erf(y/sqrt(2)))  ==  GELU_C * h * (1 + erf(h)),  h = y/sqrt(2)
GELU_C = float(0.5 * np.sqrt(2.0))


# --------------------------- kernel helpers ---------------------------
def _layer_norm(x, g, b):
    mu = jnp.mean(x, axis=-1, keepdims=True)
    var = jnp.mean((x - mu) ** 2, axis=-1, keepdims=True)
    return (x - mu) * jax.lax.rsqrt(var + EPS) * g + b


# --------------------------- fused Pallas kernel ---------------------------
def fused_transformer_kernel(x_ref, elo_ref, welo_ref, wqkv_ref, wout_ref,
                             w1_ref, w2_ref, vecs_ref, o_ref):
    x = x_ref[...]                     # (B*N, DIM)   batch & sequence merged
    elo = elo_ref[...]                 # (B, ELO_DIM)

    # elo projection for ALL layers in one MXU pass (hoisted out of the loop)
    elo_q_all = jnp.dot(elo, welo_ref[...],
                        preferred_element_type=jnp.float32)   # (B, DEPTH*INNER)

    for l in range(DEPTH):             # unrolled (DEPTH = 2)
        vl = vecs_ref[l]               # (8, VEC_W)
        ln1g = vl[0:1, :DIM]
        ln1b = vl[1:2, :DIM]
        bout = vl[2:3, :DIM]
        ln2g = vl[3:4, :DIM]
        ln2b = vl[4:5, :DIM]
        b2 = vl[5:6, :DIM]
        b1 = vl[6:7, :MLP_DIM]         # pre-scaled by 1/sqrt(2) at pack time

        # ---------------- EloAwareAttention ----------------
        xn = _layer_norm(x, ln1g, ln1b)                                     # (B*N, DIM)
        qkv = jnp.dot(xn, wqkv_ref[l],
                      preferred_element_type=jnp.float32)                   # (B*N, 3*INNER)
        qkv3 = qkv.reshape(B, N, 3 * INNER)                                 # leading-dim reshape

        elo_q = elo_q_all[:, l * INNER:(l + 1) * INNER]                     # (B, INNER)
        q3 = qkv3[:, :, 0:INNER] + elo_q[:, None, :]                        # (B, N, INNER)
        k3 = qkv3[:, :, INNER:2 * INNER]
        v3 = qkv3[:, :, 2 * INNER:3 * INNER]

        head_outs = []
        for h in range(HEADS):                                              # unrolled (4)
            c0, c1 = h * DIM_HEAD, (h + 1) * DIM_HEAD
            qh = q3[:, :, c0:c1]                                            # (B, N, dh)
            kh = k3[:, :, c0:c1]
            vh = v3[:, :, c0:c1]
            # batched over B in one dot_general (leading batch dim)
            dots = jnp.einsum('bnd,bmd->bnm', qh, kh,
                              preferred_element_type=jnp.float32) * SCALE   # (B, N, N)
            dots = dots - jnp.max(dots, axis=-1, keepdims=True)
            p = jnp.exp(dots)
            attn = p * pl.reciprocal(jnp.sum(p, axis=-1, keepdims=True),
                                     approx=True)
            head_outs.append(jnp.einsum('bnm,bmd->bnd', attn, vh,
                                        preferred_element_type=jnp.float32))
        attn_cat = jnp.concatenate(head_outs, axis=-1).reshape(B * N, INNER)

        # single fused output projection + residual
        x = x + jnp.dot(attn_cat, wout_ref[l],
                        preferred_element_type=jnp.float32) + bout

        # ---------------- FeedForward ----------------
        xn2 = _layer_norm(x, ln2g, ln2b)
        h1 = jnp.dot(xn2, w1_ref[l], preferred_element_type=jnp.float32) + b1
        g1 = GELU_C * h1 * (1.0 + jax.lax.erf(h1))       # exact GELU, pre-scale folded
        x = x + jnp.dot(g1, w2_ref[l], preferred_element_type=jnp.float32) + b2

    # ---------------- final LayerNorm ----------------
    vf = vecs_ref[DEPTH]
    o_ref[...] = _layer_norm(x, vf[0:1, :DIM], vf[1:2, :DIM])


# Whole problem fits trivially in VMEM -> no grid, full-array blocks.
_fused_call = pl.pallas_call(
    fused_transformer_kernel,
    out_shape=jax.ShapeDtypeStruct((B * N, DIM), jnp.float32),
    input_output_aliases={0: 0},                  # x aliases the output buffer
    cost_estimate=pl.CostEstimate(flops=620_000,
                                  transcendentals=3_200,
                                  bytes_accessed=90_000),
)


# --------------------------- weight packing ---------------------------
def _vec_row(vec):
    vec = vec.reshape(-1).astype(jnp.float32)
    return jnp.pad(vec, (0, VEC_W - vec.shape[0]))


def pack_params(params):
    """Depth-stack per-layer weights into separate, full-tile buffers."""
    layers = params["layers"]
    wqkv = jnp.stack([lp["wqkv"] for lp in layers])                  # (DEPTH, DIM, 3*INNER)
    welo = jnp.concatenate([lp["welo"] for lp in layers], axis=1)    # (ELO_DIM, DEPTH*INNER)
    wout = jnp.stack([lp["wout"] for lp in layers])                  # (DEPTH, INNER, DIM)
    w1 = jnp.stack([lp["w1"] * INV_SQRT2 for lp in layers])          # GELU pre-scale folded
    w2 = jnp.stack([lp["w2"] for lp in layers])                      # (DEPTH, MLP_DIM, DIM)
    vecs = []
    for lp in layers:
        vecs.append(jnp.stack([
            _vec_row(lp["ln1g"]), _vec_row(lp["ln1b"]), _vec_row(lp["bout"]),
            _vec_row(lp["ln2g"]), _vec_row(lp["ln2b"]), _vec_row(lp["b2"]),
            _vec_row(lp["b1"] * INV_SQRT2),
            jnp.zeros((VEC_W,), jnp.float32)]))                      # (8, VEC_W)
    vecs.append(jnp.stack(
        [_vec_row(params["lng"]), _vec_row(params["lnb"])] +
        [jnp.zeros((VEC_W,), jnp.float32)] * 6))                     # final-LN slot
    return (wqkv, welo, wout, w1, w2, jnp.stack(vecs))


@jax.jit
def transformer_forward(x, elo_emb, packed):
    """x: (B, N, DIM) f32, elo_emb: (B, ELO_DIM) f32."""
    wqkv, welo, wout, w1, w2, vecs = packed
    x2d = x.reshape(B * N, DIM)
    out = _fused_call(x2d, elo_emb, welo, wqkv, wout, w1, w2, vecs)
    return out.reshape(B, N, DIM)


# --------------------------- pure-JAX reference ---------------------------
def _ref_ln(x, g, b):
    mu = jnp.mean(x, axis=-1, keepdims=True)
    var = jnp.mean((x - mu) ** 2, axis=-1, keepdims=True)
    return (x - mu) / jnp.sqrt(var + EPS) * g + b


def transformer_reference(x, elo_emb, params):
    for lp in params["layers"]:
        xn = _ref_ln(x, lp["ln1g"], lp["ln1b"])
        qkv = xn @ lp["wqkv"]
        q, k, v = jnp.split(qkv, 3, axis=-1)

        def heads(t):  # b n (h d) -> b h n d
            return t.reshape(B, N, HEADS, DIM_HEAD).transpose(0, 2, 1, 3)

        q, k, v = heads(q), heads(k), heads(v)
        elo_eff = (elo_emb @ lp["welo"]).reshape(B, HEADS, 1, DIM_HEAD)
        q = q + elo_eff
        dots = jnp.einsum("bhnd,bhmd->bhnm", q, k) * SCALE
        attn = jax.nn.softmax(dots, axis=-1)
        out = jnp.einsum("bhnm,bhmd->bhnd", attn, v)
        out = out.transpose(0, 2, 1, 3).reshape(B, N, INNER)
        x = out @ lp["wout"] + lp["bout"] + x
        xn2 = _ref_ln(x, lp["ln2g"], lp["ln2b"])
        h = jax.nn.gelu(xn2 @ lp["w1"] + lp["b1"], approximate=False)
        x = h @ lp["w2"] + lp["b2"] + x
    return _ref_ln(x, params["lng"], params["lnb"])


# --------------------------- parameter init ---------------------------
def init_params(key):
    params = {"layers": []}
    for _ in range(DEPTH):
        keys = jax.random.split(key, 8)
        key = keys[0]
        lp = {
            "ln1g": jnp.ones((1, DIM), jnp.float32),
            "ln1b": jnp.zeros((1, DIM), jnp.float32),
            "wqkv": 0.05 * jax.random.normal(keys[1], (DIM, 3 * INNER), jnp.float32),
            "welo": 0.05 * jax.random.normal(keys[2], (ELO_DIM, INNER), jnp.float32),
            "wout": 0.05 * jax.random.normal(keys[3], (INNER, DIM), jnp.float32),
            "bout": 0.01 * jax.random.normal(keys[4], (1, DIM), jnp.float32),
            "ln2g": jnp.ones((1, DIM), jnp.float32),
            "ln2b": jnp.zeros((1, DIM), jnp.float32),
            "w1": 0.05 * jax.random.normal(keys[5], (DIM, MLP_DIM), jnp.float32),
            "b1": 0.01 * jax.random.normal(keys[6], (1, MLP_DIM), jnp.float32),
            "w2": 0.05 * jax.random.normal(keys[7], (MLP_DIM, DIM), jnp.float32),
            "b2": jnp.zeros((1, DIM), jnp.float32),
        }
        params["layers"].append(lp)
    params["lng"] = jnp.ones((1, DIM), jnp.float32)
    params["lnb"] = jnp.zeros((1, DIM), jnp.float32)
    return params


# --------------------------- main ---------------------------
if __name__ == "__main__":
    key = jax.random.PRNGKey(0)
    kx, ke, kp = jax.random.split(key, 3)
    x = jax.random.normal(kx, (B, N, DIM), jnp.float32)
    elo_emb = jax.random.normal(ke, (B, ELO_DIM), jnp.float32)
    params = init_params(kp)

    packed = pack_params(params)
    out = transformer_forward(x, elo_emb, packed)
    out = jax.block_until_ready(out)

    ref = transformer_reference(x, elo_emb, params)
    np.testing.assert_allclose(np.asarray(out), np.asarray(ref), rtol=2e-4, atol=2e-4)

    print("KERNEL_OK")
</pallas_src>

<mosaic_0001>
module attributes {stable_mosaic.version = 11 : i64} {
  func.func @fused_transformer_kernel(%arg0: memref<16x32xf32, #tpu.memory_space<vmem>>, %arg1: memref<2x16xf32, #tpu.memory_space<vmem>>, %arg2: memref<16x64xf32, #tpu.memory_space<vmem>>, %arg3: memref<2x32x96xf32, #tpu.memory_space<vmem>>, %arg4: memref<2x32x32xf32, #tpu.memory_space<vmem>>, %arg5: memref<2x32x64xf32, #tpu.memory_space<vmem>>, %arg6: memref<2x64x32xf32, #tpu.memory_space<vmem>>, %arg7: memref<3x8x64xf32, #tpu.memory_space<vmem>>, %arg8: memref<16x32xf32, #tpu.memory_space<vmem>>) attributes {dimension_semantics = [], scalar_prefetch = 0 : i64, scratch_operands = 0 : i64, tpu.core_type = #tpu.core_type<tc>} {
    %c0 = arith.constant 0 : index
    %c0_0 = arith.constant 0 : index
    %0 = vector.load %arg0[%c0, %c0_0] : memref<16x32xf32, #tpu.memory_space<vmem>>, vector<16x32xf32>
    %c0_1 = arith.constant 0 : index
    %c0_2 = arith.constant 0 : index
    %1 = vector.load %arg1[%c0_1, %c0_2] : memref<2x16xf32, #tpu.memory_space<vmem>>, vector<2x16xf32>
    %c0_3 = arith.constant 0 : index
    %c0_4 = arith.constant 0 : index
    %2 = vector.load %arg2[%c0_3, %c0_4] : memref<16x64xf32, #tpu.memory_space<vmem>>, vector<16x64xf32>
    %cst = arith.constant dense<0.000000e+00> : vector<2x64xf32>
    %3 = tpu.matmul %1, %2, %cst {dimension_numbers = #tpu.dot_dimension_numbers<[1], [0], [0], [1], [0, 0, 1, 1], [], []>} : vector<2x16xf32>, vector<16x64xf32>, vector<2x64xf32> -> vector<2x64xf32>
    %c0_5 = arith.constant 0 : index
    %c0_6 = arith.constant 0 : index
    %c0_7 = arith.constant 0 : index
    %4 = vector.load %arg7[%c0_5, %c0_6, %c0_7] : memref<3x8x64xf32, #tpu.memory_space<vmem>>, vector<1x8x64xf32>
    %5 = vector.shape_cast %4 : vector<1x8x64xf32> to vector<8x64xf32>
    %6 = vector.extract_strided_slice %5 {offsets = [0, 0], sizes = [1, 32], strides = [1, 1]} : vector<8x64xf32> to vector<1x32xf32>
    %7 = vector.extract_strided_slice %5 {offsets = [1, 0], sizes = [1, 32], strides = [1, 1]} : vector<8x64xf32> to vector<1x32xf32>
    %8 = vector.extract_strided_slice %5 {offsets = [2, 0], sizes = [1, 32], strides = [1, 1]} : vector<8x64xf32> to vector<1x32xf32>
    %9 = vector.extract_strided_slice %5 {offsets = [3, 0], sizes = [1, 32], strides = [1, 1]} : vector<8x64xf32> to vector<1x32xf32>
    %10 = vector.extract_strided_slice %5 {offsets = [4, 0], sizes = [1, 32], strides = [1, 1]} : vector<8x64xf32> to vector<1x32xf32>
    %11 = vector.extract_strided_slice %5 {offsets = [5, 0], sizes = [1, 32], strides = [1, 1]} : vector<8x64xf32> to vector<1x32xf32>
    %12 = vector.extract_strided_slice %5 {offsets = [6, 0], sizes = [1, 64], strides = [1, 1]} : vector<8x64xf32> to vector<1x64xf32>
    %cst_8 = arith.constant dense<0.000000e+00> : vector<16xf32>
    %13 = vector.multi_reduction <add>, %0, %cst_8 [1] : vector<16x32xf32> to vector<16xf32>
    %14 = vector.shape_cast %13 : vector<16xf32> to vector<16x1xf32>
    %cst_9 = arith.constant 3.200000e+01 : f32
    %15 = vector.broadcast %cst_9 : f32 to vector<16x1xf32>
    %16 = arith.divf %14, %15 : vector<16x1xf32>
    %17 = vector.broadcast %16 : vector<16x1xf32> to vector<16x32xf32>
    %18 = arith.subf %0, %17 : vector<16x32xf32>
    %19 = arith.mulf %18, %18 : vector<16x32xf32>
    %cst_10 = arith.constant dense<0.000000e+00> : vector<16xf32>
    %20 = vector.multi_reduction <add>, %19, %cst_10 [1] : vector<16x32xf32> to vector<16xf32>
    %21 = vector.shape_cast %20 : vector<16xf32> to vector<16x1xf32>
    %cst_11 = arith.constant 3.200000e+01 : f32
    %22 = vector.broadcast %cst_11 : f32 to vector<16x1xf32>
    %23 = arith.divf %21, %22 : vector<16x1xf32>
    %24 = vector.broadcast %16 : vector<16x1xf32> to vector<16x32xf32>
    %25 = arith.subf %0, %24 : vector<16x32xf32>
    %cst_12 = arith.constant 9.99999974E-6 : f32
    %26 = vector.broadcast %cst_12 : f32 to vector<16x1xf32>
    %27 = arith.addf %23, %26 : vector<16x1xf32>
    %28 = math.rsqrt %27 : vector<16x1xf32>
    %29 = vector.broadcast %28 : vector<16x1xf32> to vector<16x32xf32>
    %30 = arith.mulf %25, %29 : vector<16x32xf32>
    %31 = vector.broadcast %6 : vector<1x32xf32> to vector<16x32xf32>
    %32 = arith.mulf %30, %31 : vector<16x32xf32>
    %33 = vector.broadcast %7 : vector<1x32xf32> to vector<16x32xf32>
    %34 = arith.addf %32, %33 : vector<16x32xf32>
    %c0_13 = arith.constant 0 : index
    %c0_14 = arith.constant 0 : index
    %c0_15 = arith.constant 0 : index
    %35 = vector.load %arg3[%c0_13, %c0_14, %c0_15] : memref<2x32x96xf32, #tpu.memory_space<vmem>>, vector<1x32x96xf32>
    %36 = vector.shape_cast %35 : vector<1x32x96xf32> to vector<32x96xf32>
    %cst_16 = arith.constant dense<0.000000e+00> : vector<16x96xf32>
    %37 = tpu.matmul %34, %36, %cst_16 {dimension_numbers = #tpu.dot_dimension_numbers<[1], [0], [0], [1], [0, 0, 1, 1], [], []>} : vector<16x32xf32>, vector<32x96xf32>, vector<16x96xf32> -> vector<16x96xf32>
    %38 = vector.shape_cast %37 : vector<16x96xf32> to vector<2x8x96xf32>
    %39 = vector.extract_strided_slice %3 {offsets = [0, 0], sizes = [2, 32], strides = [1, 1]} : vector<2x64xf32> to vector<2x32xf32>
    %40 = vector.extract_strided_slice %38 {offsets = [0, 0, 0], sizes = [2, 8, 32], strides = [1, 1, 1]} : vector<2x8x96xf32> to vector<2x8x32xf32>
    %41 = vector.shape_cast %39 : vector<2x32xf32> to vector<2x1x32xf32>
    %42 = vector.broadcast %41 : vector<2x1x32xf32> to vector<2x8x32xf32>
    %43 = arith.addf %40, %42 : vector<2x8x32xf32>
    %44 = vector.extract_strided_slice %38 {offsets = [0, 0, 32], sizes = [2, 8, 32], strides = [1, 1, 1]} : vector<2x8x96xf32> to vector<2x8x32xf32>
    %45 = vector.extract_strided_slice %38 {offsets = [0, 0, 64], sizes = [2, 8, 32], strides = [1, 1, 1]} : vector<2x8x96xf32> to vector<2x8x32xf32>
    %46 = vector.extract_strided_slice %43 {offsets = [0, 0, 0], sizes = [2, 8, 8], strides = [1, 1, 1]} : vector<2x8x32xf32> to vector<2x8x8xf32>
    %47 = vector.extract_strided_slice %44 {offsets = [0, 0, 0], sizes = [2, 8, 8], strides = [1, 1, 1]} : vector<2x8x32xf32> to vector<2x8x8xf32>
    %48 = vector.extract_strided_slice %45 {offsets = [0, 0, 0], sizes = [2, 8, 8], strides = [1, 1, 1]} : vector<2x8x32xf32> to vector<2x8x8xf32>
    "tpu.trace_start"() <{level = 10 : i32, message = "bnd,bmd->bnm"}> : () -> ()
    %cst_17 = arith.constant dense<0.000000e+00> : vector<2x8x8xf32>
    %49 = tpu.matmul %46, %47, %cst_17 {dimension_numbers = #tpu.dot_dimension_numbers<[2], [2], [1], [1], [0, 0, 0, 1, 1, 1], [0], [0]>} : vector<2x8x8xf32>, vector<2x8x8xf32>, vector<2x8x8xf32> -> vector<2x8x8xf32>
    "tpu.trace_stop"() : () -> ()
    %cst_18 = arith.constant 0.353553385 : f32
    %50 = vector.broadcast %cst_18 : f32 to vector<2x8x8xf32>
    %51 = arith.mulf %49, %50 : vector<2x8x8xf32>
    %cst_19 = arith.constant dense<0xFF800000> : vector<2x8xf32>
    %52 = vector.multi_reduction <maximumf>, %51, %cst_19 [2] : vector<2x8x8xf32> to vector<2x8xf32>
    %53 = vector.shape_cast %52 : vector<2x8xf32> to vector<2x8x1xf32>
    %54 = vector.broadcast %53 : vector<2x8x1xf32> to vector<2x8x8xf32>
    %55 = arith.subf %51, %54 : vector<2x8x8xf32>
    %56 = math.exp %55 : vector<2x8x8xf32>
    %cst_20 = arith.constant dense<0.000000e+00> : vector<2x8xf32>
    %57 = vector.multi_reduction <add>, %56, %cst_20 [2] : vector<2x8x8xf32> to vector<2x8xf32>
    %58 = vector.shape_cast %57 : vector<2x8xf32> to vector<2x8x1xf32>
    %59 = tpu.reciprocal %58 {approx = true} : vector<2x8x1xf32> -> vector<2x8x1xf32>
    %60 = vector.broadcast %59 : vector<2x8x1xf32> to vector<2x8x8xf32>
    %61 = arith.mulf %56, %60 : vector<2x8x8xf32>
    "tpu.trace_start"() <{level = 10 : i32, message = "bnm,bmd->bnd"}> : () -> ()
    %cst_21 = arith.constant dense<0.000000e+00> : vector<2x8x8xf32>
    %62 = tpu.matmul %61, %48, %cst_21 {dimension_numbers = #tpu.dot_dimension_numbers<[2], [1], [1], [2], [0, 0, 0, 1, 1, 2], [0], [0]>} : vector<2x8x8xf32>, vector<2x8x8xf32>, vector<2x8x8xf32> -> vector<2x8x8xf32>
    "tpu.trace_stop"() : () -> ()
    %63 = vector.extract_strided_slice %43 {offsets = [0, 0, 8], sizes = [2, 8, 8], strides = [1, 1, 1]} : vector<2x8x32xf32> to vector<2x8x8xf32>
    %64 = vector.extract_strided_slice %44 {offsets = [0, 0, 8], sizes = [2, 8, 8], strides = [1, 1, 1]} : vector<2x8x32xf32> to vector<2x8x8xf32>
    %65 = vector.extract_strided_slice %45 {offsets = [0, 0, 8], sizes = [2, 8, 8], strides = [1, 1, 1]} : vector<2x8x32xf32> to vector<2x8x8xf32>
    "tpu.trace_start"() <{level = 10 : i32, message = "bnd,bmd->bnm"}> : () -> ()
    %cst_22 = arith.constant dense<0.000000e+00> : vector<2x8x8xf32>
    %66 = tpu.matmul %63, %64, %cst_22 {dimension_numbers = #tpu.dot_dimension_numbers<[2], [2], [1], [1], [0, 0, 0, 1, 1, 1], [0], [0]>} : vector<2x8x8xf32>, vector<2x8x8xf32>, vector<2x8x8xf32> -> vector<2x8x8xf32>
    "tpu.trace_stop"() : () -> ()
    %cst_23 = arith.constant 0.353553385 : f32
    %67 = vector.broadcast %cst_23 : f32 to vector<2x8x8xf32>
    %68 = arith.mulf %66, %67 : vector<2x8x8xf32>
    %cst_24 = arith.constant dense<0xFF800000> : vector<2x8xf32>
    %69 = vector.multi_reduction <maximumf>, %68, %cst_24 [2] : vector<2x8x8xf32> to vector<2x8xf32>
    %70 = vector.shape_cast %69 : vector<2x8xf32> to vector<2x8x1xf32>
    %71 = vector.broadcast %70 : vector<2x8x1xf32> to vector<2x8x8xf32>
    %72 = arith.subf %68, %71 : vector<2x8x8xf32>
    %73 = math.exp %72 : vector<2x8x8xf32>
    %cst_25 = arith.constant dense<0.000000e+00> : vector<2x8xf32>
    %74 = vector.multi_reduction <add>, %73, %cst_25 [2] : vector<2x8x8xf32> to vector<2x8xf32>
    %75 = vector.shape_cast %74 : vector<2x8xf32> to vector<2x8x1xf32>
    %76 = tpu.reciprocal %75 {approx = true} : vector<2x8x1xf32> -> vector<2x8x1xf32>
    %77 = vector.broadcast %76 : vector<2x8x1xf32> to vector<2x8x8xf32>
    %78 = arith.mulf %73, %77 : vector<2x8x8xf32>
    "tpu.trace_start"() <{level = 10 : i32, message = "bnm,bmd->bnd"}> : () -> ()
    %cst_26 = arith.constant dense<0.000000e+00> : vector<2x8x8xf32>
    %79 = tpu.matmul %78, %65, %cst_26 {dimension_numbers = #tpu.dot_dimension_numbers<[2], [1], [1], [2], [0, 0, 0, 1, 1, 2], [0], [0]>} : vector<2x8x8xf32>, vector<2x8x8xf32>, vector<2x8x8xf32> -> vector<2x8x8xf32>
    "tpu.trace_stop"() : () -> ()
    %80 = vector.extract_strided_slice %43 {offsets = [0, 0, 16], sizes = [2, 8, 8], strides = [1, 1, 1]} : vector<2x8x32xf32> to vector<2x8x8xf32>
    %81 = vector.extract_strided_slice %44 {offsets = [0, 0, 16], sizes = [2, 8, 8], strides = [1, 1, 1]} : vector<2x8x32xf32> to vector<2x8x8xf32>
    %82 = vector.extract_strided_slice %45 {offsets = [0, 0, 16], sizes = [2, 8, 8], strides = [1, 1, 1]} : vector<2x8x32xf32> to vector<2x8x8xf32>
    "tpu.trace_start"() <{level = 10 : i32, message = "bnd,bmd->bnm"}> : () -> ()
    %cst_27 = arith.constant dense<0.000000e+00> : vector<2x8x8xf32>
    %83 = tpu.matmul %80, %81, %cst_27 {dimension_numbers = #tpu.dot_dimension_numbers<[2], [2], [1], [1], [0, 0, 0, 1, 1, 1], [0], [0]>} : vector<2x8x8xf32>, vector<2x8x8xf32>, vector<2x8x8xf32> -> vector<2x8x8xf32>
    "tpu.trace_stop"() : () -> ()
    %cst_28 = arith.constant 0.353553385 : f32
    %84 = vector.broadcast %cst_28 : f32 to vector<2x8x8xf32>
    %85 = arith.mulf %83, %84 : vector<2x8x8xf32>
    %cst_29 = arith.constant dense<0xFF800000> : vector<2x8xf32>
    %86 = vector.multi_reduction <maximumf>, %85, %cst_29 [2] : vector<2x8x8xf32> to vector<2x8xf32>
    %87 = vector.shape_cast %86 : vector<2x8xf32> to vector<2x8x1xf32>
    %88 = vector.broadcast %87 : vector<2x8x1xf32> to vector<2x8x8xf32>
    %89 = arith.subf %85, %88 : vector<2x8x8xf32>
    %90 = math.exp %89 : vector<2x8x8xf32>
    %cst_30 = arith.constant dense<0.000000e+00> : vector<2x8xf32>
    %91 = vector.multi_reduction <add>, %90, %cst_30 [2] : vector<2x8x8xf32> to vector<2x8xf32>
    %92 = vector.shape_cast %91 : vector<2x8xf32> to vector<2x8x1xf32>
    %93 = tpu.reciprocal %92 {approx = true} : vector<2x8x1xf32> -> vector<2x8x1xf32>
    %94 = vector.broadcast %93 : vector<2x8x1xf32> to vector<2x8x8xf32>
    %95 = arith.mulf %90, %94 : vector<2x8x8xf32>
    "tpu.trace_start"() <{level = 10 : i32, message = "bnm,bmd->bnd"}> : () -> ()
    %cst_31 = arith.constant dense<0.000000e+00> : vector<2x8x8xf32>
    %96 = tpu.matmul %95, %82, %cst_31 {dimension_numbers = #tpu.dot_dimension_numbers<[2], [1], [1], [2], [0, 0, 0, 1, 1, 2], [0], [0]>} : vector<2x8x8xf32>, vector<2x8x8xf32>, vector<2x8x8xf32> -> vector<2x8x8xf32>
    "tpu.trace_stop"() : () -> ()
    %97 = vector.extract_strided_slice %43 {offsets = [0, 0, 24], sizes = [2, 8, 8], strides = [1, 1, 1]} : vector<2x8x32xf32> to vector<2x8x8xf32>
    %98 = vector.extract_strided_slice %44 {offsets = [0, 0, 24], sizes = [2, 8, 8], strides = [1, 1, 1]} : vector<2x8x32xf32> to vector<2x8x8xf32>
    %99 = vector.extract_strided_slice %45 {offsets = [0, 0, 24], sizes = [2, 8, 8], strides = [1, 1, 1]} : vector<2x8x32xf32> to vector<2x8x8xf32>
    "tpu.trace_start"() <{level = 10 : i32, message = "bnd,bmd->bnm"}> : () -> ()
    %cst_32 = arith.constant dense<0.000000e+00> : vector<2x8x8xf32>
    %100 = tpu.matmul %97, %98, %cst_32 {dimension_numbers = #tpu.dot_dimension_numbers<[2], [2], [1], [1], [0, 0, 0, 1, 1, 1], [0], [0]>} : vector<2x8x8xf32>, vector<2x8x8xf32>, vector<2x8x8xf32> -> vector<2x8x8xf32>
    "tpu.trace_stop"() : () -> ()
    %cst_33 = arith.constant 0.353553385 : f32
    %101 = vector.broadcast %cst_33 : f32 to vector<2x8x8xf32>
    %102 = arith.mulf %100, %101 : vector<2x8x8xf32>
    %cst_34 = arith.constant dense<0xFF800000> : vector<2x8xf32>
    %103 = vector.multi_reduction <maximumf>, %102, %cst_34 [2] : vector<2x8x8xf32> to vector<2x8xf32>
    %104 = vector.shape_cast %103 : vector<2x8xf32> to vector<2x8x1xf32>
    %105 = vector.broadcast %104 : vector<2x8x1xf32> to vector<2x8x8xf32>
    %106 = arith.subf %102, %105 : vector<2x8x8xf32>
    %107 = math.exp %106 : vector<2x8x8xf32>
    %cst_35 = arith.constant dense<0.000000e+00> : vector<2x8xf32>
    %108 = vector.multi_reduction <add>, %107, %cst_35 [2] : vector<2x8x8xf32> to vector<2x8xf32>
    %109 = vector.shape_cast %108 : vector<2x8xf32> to vector<2x8x1xf32>
    %110 = tpu.reciprocal %109 {approx = true} : vector<2x8x1xf32> -> vector<2x8x1xf32>
    %111 = vector.broadcast %110 : vector<2x8x1xf32> to vector<2x8x8xf32>
    %112 = arith.mulf %107, %111 : vector<2x8x8xf32>
    "tpu.trace_start"() <{level = 10 : i32, message = "bnm,bmd->bnd"}> : () -> ()
    %cst_36 = arith.constant dense<0.000000e+00> : vector<2x8x8xf32>
    %113 = tpu.matmul %112, %99, %cst_36 {dimension_numbers = #tpu.dot_dimension_numbers<[2], [1], [1], [2], [0, 0, 0, 1, 1, 2], [0], [0]>} : vector<2x8x8xf32>, vector<2x8x8xf32>, vector<2x8x8xf32> -> vector<2x8x8xf32>
    "tpu.trace_stop"() : () -> ()
    %114 = tpu.concatenate %62, %79, %96, %113 in 2 : vector<2x8x8xf32>, vector<2x8x8xf32>, vector<2x8x8xf32>, vector<2x8x8xf32> -> vector<2x8x32xf32>
    %115 = vector.shape_cast %114 : vector<2x8x32xf32> to vector<16x32xf32>
    %c0_37 = arith.constant 0 : index
    %c0_38 = arith.constant 0 : index
    %c0_39 = arith.constant 0 : index
    %116 = vector.load %arg4[%c0_37, %c0_38, %c0_39] : memref<2x32x32xf32, #tpu.memory_space<vmem>>, vector<1x32x32xf32>
    %117 = vector.shape_cast %116 : vector<1x32x32xf32> to vector<32x32xf32>
    %cst_40 = arith.constant dense<0.000000e+00> : vector<16x32xf32>
    %118 = tpu.matmul %115, %117, %cst_40 {dimension_numbers = #tpu.dot_dimension_numbers<[1], [0], [0], [1], [0, 0, 1, 1], [], []>} : vector<16x32xf32>, vector<32x32xf32>, vector<16x32xf32> -> vector<16x32xf32>
    %119 = arith.addf %0, %118 : vector<16x32xf32>
    %120 = vector.broadcast %8 : vector<1x32xf32> to vector<16x32xf32>
    %121 = arith.addf %119, %120 : vector<16x32xf32>
    %cst_41 = arith.constant dense<0.000000e+00> : vector<16xf32>
    %122 = vector.multi_reduction <add>, %121, %cst_41 [1] : vector<16x32xf32> to vector<16xf32>
    %123 = vector.shape_cast %122 : vector<16xf32> to vector<16x1xf32>
    %cst_42 = arith.constant 3.200000e+01 : f32
    %124 = vector.broadcast %cst_42 : f32 to vector<16x1xf32>
    %125 = arith.divf %123, %124 : vector<16x1xf32>
    %126 = vector.broadcast %125 : vector<16x1xf32> to vector<16x32xf32>
    %127 = arith.subf %121, %126 : vector<16x32xf32>
    %128 = arith.mulf %127, %127 : vector<16x32xf32>
    %cst_43 = arith.constant dense<0.000000e+00> : vector<16xf32>
    %129 = vector.multi_reduction <add>, %128, %cst_43 [1] : vector<16x32xf32> to vector<16xf32>
    %130 = vector.shape_cast %129 : vector<16xf32> to vector<16x1xf32>
    %cst_44 = arith.constant 3.200000e+01 : f32
    %131 = vector.broadcast %cst_44 : f32 to vector<16x1xf32>
    %132 = arith.divf %130, %131 : vector<16x1xf32>
    %133 = vector.broadcast %125 : vector<16x1xf32> to vector<16x32xf32>
    %134 = arith.subf %121, %133 : vector<16x32xf32>
    %cst_45 = arith.constant 9.99999974E-6 : f32
    %135 = vector.broadcast %cst_45 : f32 to vector<16x1xf32>
    %136 = arith.addf %132, %135 : vector<16x1xf32>
    %137 = math.rsqrt %136 : vector<16x1xf32>
    %138 = vector.broadcast %137 : vector<16x1xf32> to vector<16x32xf32>
    %139 = arith.mulf %134, %138 : vector<16x32xf32>
    %140 = vector.broadcast %9 : vector<1x32xf32> to vector<16x32xf32>
    %141 = arith.mulf %139, %140 : vector<16x32xf32>
    %142 = vector.broadcast %10 : vector<1x32xf32> to vector<16x32xf32>
    %143 = arith.addf %141, %142 : vector<16x32xf32>
    %c0_46 = arith.constant 0 : index
    %c0_47 = arith.constant 0 : index
    %c0_48 = arith.constant 0 : index
    %144 = vector.load %arg5[%c0_46, %c0_47, %c0_48] : memref<2x32x64xf32, #tpu.memory_space<vmem>>, vector<1x32x64xf32>
    %145 = vector.shape_cast %144 : vector<1x32x64xf32> to vector<32x64xf32>
    %cst_49 = arith.constant dense<0.000000e+00> : vector<16x64xf32>
    %146 = tpu.matmul %143, %145, %cst_49 {dimension_numbers = #tpu.dot_dimension_numbers<[1], [0], [0], [1], [0, 0, 1, 1], [], []>} : vector<16x32xf32>, vector<32x64xf32>, vector<16x64xf32> -> vector<16x64xf32>
    %147 = vector.broadcast %12 : vector<1x64xf32> to vector<16x64xf32>
    %148 = arith.addf %146, %147 : vector<16x64xf32>
    %cst_50 = arith.constant 0.707106769 : f32
    %149 = vector.broadcast %cst_50 : f32 to vector<16x64xf32>
    %150 = arith.mulf %149, %148 : vector<16x64xf32>
    %151 = math.erf %148 : vector<16x64xf32>
    %cst_51 = arith.constant 1.000000e+00 : f32
    %152 = vector.broadcast %cst_51 : f32 to vector<16x64xf32>
    %153 = arith.addf %152, %151 : vector<16x64xf32>
    %154 = arith.mulf %150, %153 : vector<16x64xf32>
    %c0_52 = arith.constant 0 : index
    %c0_53 = arith.constant 0 : index
    %c0_54 = arith.constant 0 : index
    %155 = vector.load %arg6[%c0_52, %c0_53, %c0_54] : memref<2x64x32xf32, #tpu.memory_space<vmem>>, vector<1x64x32xf32>
    %156 = vector.shape_cast %155 : vector<1x64x32xf32> to vector<64x32xf32>
    %cst_55 = arith.constant dense<0.000000e+00> : vector<16x32xf32>
    %157 = tpu.matmul %154, %156, %cst_55 {dimension_numbers = #tpu.dot_dimension_numbers<[1], [0], [0], [1], [0, 0, 1, 1], [], []>} : vector<16x64xf32>, vector<64x32xf32>, vector<16x32xf32> -> vector<16x32xf32>
    %158 = arith.addf %121, %157 : vector<16x32xf32>
    %159 = vector.broadcast %11 : vector<1x32xf32> to vector<16x32xf32>
    %160 = arith.addf %158, %159 : vector<16x32xf32>
    %c1 = arith.constant 1 : index
    %c0_56 = arith.constant 0 : index
    %c0_57 = arith.constant 0 : index
    %161 = vector.load %arg7[%c1, %c0_56, %c0_57] : memref<3x8x64xf32, #tpu.memory_space<vmem>>, vector<1x8x64xf32>
    %162 = vector.shape_cast %161 : vector<1x8x64xf32> to vector<8x64xf32>
    %163 = vector.extract_strided_slice %162 {offsets = [0, 0], sizes = [1, 32], strides = [1, 1]} : vector<8x64xf32> to vector<1x32xf32>
    %164 = vector.extract_strided_slice %162 {offsets = [1, 0], sizes = [1, 32], strides = [1, 1]} : vector<8x64xf32> to vector<1x32xf32>
    %165 = vector.extract_strided_slice %162 {offsets = [2, 0], sizes = [1, 32], strides = [1, 1]} : vector<8x64xf32> to vector<1x32xf32>
    %166 = vector.extract_strided_slice %162 {offsets = [3, 0], sizes = [1, 32], strides = [1, 1]} : vector<8x64xf32> to vector<1x32xf32>
    %167 = vector.extract_strided_slice %162 {offsets = [4, 0], sizes = [1, 32], strides = [1, 1]} : vector<8x64xf32> to vector<1x32xf32>
    %168 = vector.extract_strided_slice %162 {offsets = [5, 0], sizes = [1, 32], strides = [1, 1]} : vector<8x64xf32> to vector<1x32xf32>
    %169 = vector.extract_strided_slice %162 {offsets = [6, 0], sizes = [1, 64], strides = [1, 1]} : vector<8x64xf32> to vector<1x64xf32>
    %cst_58 = arith.constant dense<0.000000e+00> : vector<16xf32>
    %170 = vector.multi_reduction <add>, %160, %cst_58 [1] : vector<16x32xf32> to vector<16xf32>
    %171 = vector.shape_cast %170 : vector<16xf32> to vector<16x1xf32>
    %cst_59 = arith.constant 3.200000e+01 : f32
    %172 = vector.broadcast %cst_59 : f32 to vector<16x1xf32>
    %173 = arith.divf %171, %172 : vector<16x1xf32>
    %174 = vector.broadcast %173 : vector<16x1xf32> to vector<16x32xf32>
    %175 = arith.subf %160, %174 : vector<16x32xf32>
    %176 = arith.mulf %175, %175 : vector<16x32xf32>
    %cst_60 = arith.constant dense<0.000000e+00> : vector<16xf32>
    %177 = vector.multi_reduction <add>, %176, %cst_60 [1] : vector<16x32xf32> to vector<16xf32>
    %178 = vector.shape_cast %177 : vector<16xf32> to vector<16x1xf32>
    %cst_61 = arith.constant 3.200000e+01 : f32
    %179 = vector.broadcast %cst_61 : f32 to vector<16x1xf32>
    %180 = arith.divf %178, %179 : vector<16x1xf32>
    %181 = vector.broadcast %173 : vector<16x1xf32> to vector<16x32xf32>
    %182 = arith.subf %160, %181 : vector<16x32xf32>
    %cst_62 = arith.constant 9.99999974E-6 : f32
    %183 = vector.broadcast %cst_62 : f32 to vector<16x1xf32>
    %184 = arith.addf %180, %183 : vector<16x1xf32>
    %185 = math.rsqrt %184 : vector<16x1xf32>
    %186 = vector.broadcast %185 : vector<16x1xf32> to vector<16x32xf32>
    %187 = arith.mulf %182, %186 : vector<16x32xf32>
    %188 = vector.broadcast %163 : vector<1x32xf32> to vector<16x32xf32>
    %189 = arith.mulf %187, %188 : vector<16x32xf32>
    %190 = vector.broadcast %164 : vector<1x32xf32> to vector<16x32xf32>
    %191 = arith.addf %189, %190 : vector<16x32xf32>
    %c1_63 = arith.constant 1 : index
    %c0_64 = arith.constant 0 : index
    %c0_65 = arith.constant 0 : index
    %192 = vector.load %arg3[%c1_63, %c0_64, %c0_65] : memref<2x32x96xf32, #tpu.memory_space<vmem>>, vector<1x32x96xf32>
    %193 = vector.shape_cast %192 : vector<1x32x96xf32> to vector<32x96xf32>
    %cst_66 = arith.constant dense<0.000000e+00> : vector<16x96xf32>
    %194 = tpu.matmul %191, %193, %cst_66 {dimension_numbers = #tpu.dot_dimension_numbers<[1], [0], [0], [1], [0, 0, 1, 1], [], []>} : vector<16x32xf32>, vector<32x96xf32>, vector<16x96xf32> -> vector<16x96xf32>
    %195 = vector.shape_cast %194 : vector<16x96xf32> to vector<2x8x96xf32>
    %196 = vector.extract_strided_slice %3 {offsets = [0, 32], sizes = [2, 32], strides = [1, 1]} : vector<2x64xf32> to vector<2x32xf32>
    %197 = vector.extract_strided_slice %195 {offsets = [0, 0, 0], sizes = [2, 8, 32], strides = [1, 1, 1]} : vector<2x8x96xf32> to vector<2x8x32xf32>
    %198 = vector.shape_cast %196 : vector<2x32xf32> to vector<2x1x32xf32>
    %199 = vector.broadcast %198 : vector<2x1x32xf32> to vector<2x8x32xf32>
    %200 = arith.addf %197, %199 : vector<2x8x32xf32>
    %201 = vector.extract_strided_slice %195 {offsets = [0, 0, 32], sizes = [2, 8, 32], strides = [1, 1, 1]} : vector<2x8x96xf32> to vector<2x8x32xf32>
    %202 = vector.extract_strided_slice %195 {offsets = [0, 0, 64], sizes = [2, 8, 32], strides = [1, 1, 1]} : vector<2x8x96xf32> to vector<2x8x32xf32>
    %203 = vector.extract_strided_slice %200 {offsets = [0, 0, 0], sizes = [2, 8, 8], strides = [1, 1, 1]} : vector<2x8x32xf32> to vector<2x8x8xf32>
    %204 = vector.extract_strided_slice %201 {offsets = [0, 0, 0], sizes = [2, 8, 8], strides = [1, 1, 1]} : vector<2x8x32xf32> to vector<2x8x8xf32>
    %205 = vector.extract_strided_slice %202 {offsets = [0, 0, 0], sizes = [2, 8, 8], strides = [1, 1, 1]} : vector<2x8x32xf32> to vector<2x8x8xf32>
    "tpu.trace_start"() <{level = 10 : i32, message = "bnd,bmd->bnm"}> : () -> ()
    %cst_67 = arith.constant dense<0.000000e+00> : vector<2x8x8xf32>
    %206 = tpu.matmul %203, %204, %cst_67 {dimension_numbers = #tpu.dot_dimension_numbers<[2], [2], [1], [1], [0, 0, 0, 1, 1, 1], [0], [0]>} : vector<2x8x8xf32>, vector<2x8x8xf32>, vector<2x8x8xf32> -> vector<2x8x8xf32>
    "tpu.trace_stop"() : () -> ()
    %cst_68 = arith.constant 0.353553385 : f32
    %207 = vector.broadcast %cst_68 : f32 to vector<2x8x8xf32>
    %208 = arith.mulf %206, %207 : vector<2x8x8xf32>
    %cst_69 = arith.constant dense<0xFF800000> : vector<2x8xf32>
    %209 = vector.multi_reduction <maximumf>, %208, %cst_69 [2] : vector<2x8x8xf32> to vector<2x8xf32>
    %210 = vector.shape_cast %209 : vector<2x8xf32> to vector<2x8x1xf32>
    %211 = vector.broadcast %210 : vector<2x8x1xf32> to vector<2x8x8xf32>
    %212 = arith.subf %208, %211 : vector<2x8x8xf32>
    %213 = math.exp %212 : vector<2x8x8xf32>
    %cst_70 = arith.constant dense<0.000000e+00> : vector<2x8xf32>
    %214 = vector.multi_reduction <add>, %213, %cst_70 [2] : vector<2x8x8xf32> to vector<2x8xf32>
    %215 = vector.shape_cast %214 : vector<2x8xf32> to vector<2x8x1xf32>
    %216 = tpu.reciprocal %215 {approx = true} : vector<2x8x1xf32> -> vector<2x8x1xf32>
    %217 = vector.broadcast %216 : vector<2x8x1xf32> to vector<2x8x8xf32>
    %218 = arith.mulf %213, %217 : vector<2x8x8xf32>
    "tpu.trace_start"() <{level = 10 : i32, message = "bnm,bmd->bnd"}> : () -> ()
    %cst_71 = arith.constant dense<0.000000e+00> : vector<2x8x8xf32>
    %219 = tpu.matmul %218, %205, %cst_71 {dimension_numbers = #tpu.dot_dimension_numbers<[2], [1], [1], [2], [0, 0, 0, 1, 1, 2], [0], [0]>} : vector<2x8x8xf32>, vector<2x8x8xf32>, vector<2x8x8xf32> -> vector<2x8x8xf32>
    "tpu.trace_stop"() : () -> ()
    %220 = vector.extract_strided_slice %200 {offsets = [0, 0, 8], sizes = [2, 8, 8], strides = [1, 1, 1]} : vector<2x8x32xf32> to vector<2x8x8xf32>
    %221 = vector.extract_strided_slice %201 {offsets = [0, 0, 8], sizes = [2, 8, 8], strides = [1, 1, 1]} : vector<2x8x32xf32> to vector<2x8x8xf32>
    %222 = vector.extract_strided_slice %202 {offsets = [0, 0, 8], sizes = [2, 8, 8], strides = [1, 1, 1]} : vector<2x8x32xf32> to vector<2x8x8xf32>
    "tpu.trace_start"() <{level = 10 : i32, message = "bnd,bmd->bnm"}> : () -> ()
    %cst_72 = arith.constant dense<0.000000e+00> : vector<2x8x8xf32>
    %223 = tpu.matmul %220, %221, %cst_72 {dimension_numbers = #tpu.dot_dimension_numbers<[2], [2], [1], [1], [0, 0, 0, 1, 1, 1], [0], [0]>} : vector<2x8x8xf32>, vector<2x8x8xf32>, vector<2x8x8xf32> -> vector<2x8x8xf32>
    "tpu.trace_stop"() : () -> ()
    %cst_73 = arith.constant 0.353553385 : f32
    %224 = vector.broadcast %cst_73 : f32 to vector<2x8x8xf32>
    %225 = arith.mulf %223, %224 : vector<2x8x8xf32>
    %cst_74 = arith.constant dense<0xFF800000> : vector<2x8xf32>
    %226 = vector.multi_reduction <maximumf>, %225, %cst_74 [2] : vector<2x8x8xf32> to vector<2x8xf32>
    %227 = vector.shape_cast %226 : vector<2x8xf32> to vector<2x8x1xf32>
    %228 = vector.broadcast %227 : vector<2x8x1xf32> to vector<2x8x8xf32>
    %229 = arith.subf %225, %228 : vector<2x8x8xf32>
    %230 = math.exp %229 : vector<2x8x8xf32>
    %cst_75 = arith.constant dense<0.000000e+00> : vector<2x8xf32>
    %231 = vector.multi_reduction <add>, %230, %cst_75 [2] : vector<2x8x8xf32> to vector<2x8xf32>
    %232 = vector.shape_cast %231 : vector<2x8xf32> to vector<2x8x1xf32>
    %233 = tpu.reciprocal %232 {approx = true} : vector<2x8x1xf32> -> vector<2x8x1xf32>
    %234 = vector.broadcast %233 : vector<2x8x1xf32> to vector<2x8x8xf32>
    %235 = arith.mulf %230, %234 : vector<2x8x8xf32>
    "tpu.trace_start"() <{level = 10 : i32, message = "bnm,bmd->bnd"}> : () -> ()
    %cst_76 = arith.constant dense<0.000000e+00> : vector<2x8x8xf32>
    %236 = tpu.matmul %235, %222, %cst_76 {dimension_numbers = #tpu.dot_dimension_numbers<[2], [1], [1], [2], [0, 0, 0, 1, 1, 2], [0], [0]>} : vector<2x8x8xf32>, vector<2x8x8xf32>, vector<2x8x8xf32> -> vector<2x8x8xf32>
    "tpu.trace_stop"() : () -> ()
    %237 = vector.extract_strided_slice %200 {offsets = [0, 0, 16], sizes = [2, 8, 8], strides = [1, 1, 1]} : vector<2x8x32xf32> to vector<2x8x8xf32>
    %238 = vector.extract_strided_slice %201 {offsets = [0, 0, 16], sizes = [2, 8, 8], strides = [1, 1, 1]} : vector<2x8x32xf32> to vector<2x8x8xf32>
    %239 = vector.extract_strided_slice %202 {offsets = [0, 0, 16], sizes = [2, 8, 8], strides = [1, 1, 1]} : vector<2x8x32xf32> to vector<2x8x8xf32>
    "tpu.trace_start"() <{level = 10 : i32, message = "bnd,bmd->bnm"}> : () -> ()
    %cst_77 = arith.constant dense<0.000000e+00> : vector<2x8x8xf32>
    %240 = tpu.matmul %237, %238, %cst_77 {dimension_numbers = #tpu.dot_dimension_numbers<[2], [2], [1], [1], [0, 0, 0, 1, 1, 1], [0], [0]>} : vector<2x8x8xf32>, vector<2x8x8xf32>, vector<2x8x8xf32> -> vector<2x8x8xf32>
    "tpu.trace_stop"() : () -> ()
    %cst_78 = arith.constant 0.353553385 : f32
    %241 = vector.broadcast %cst_78 : f32 to vector<2x8x8xf32>
    %242 = arith.mulf %240, %241 : vector<2x8x8xf32>
    %cst_79 = arith.constant dense<0xFF800000> : vector<2x8xf32>
    %243 = vector.multi_reduction <maximumf>, %242, %cst_79 [2] : vector<2x8x8xf32> to vector<2x8xf32>
    %244 = vector.shape_cast %243 : vector<2x8xf32> to vector<2x8x1xf32>
    %245 = vector.broadcast %244 : vector<2x8x1xf32> to vector<2x8x8xf32>
    %246 = arith.subf %242, %245 : vector<2x8x8xf32>
    %247 = math.exp %246 : vector<2x8x8xf32>
    %cst_80 = arith.constant dense<0.000000e+00> : vector<2x8xf32>
    %248 = vector.multi_reduction <add>, %247, %cst_80 [2] : vector<2x8x8xf32> to vector<2x8xf32>
    %249 = vector.shape_cast %248 : vector<2x8xf32> to vector<2x8x1xf32>
    %250 = tpu.reciprocal %249 {approx = true} : vector<2x8x1xf32> -> vector<2x8x1xf32>
    %251 = vector.broadcast %250 : vector<2x8x1xf32> to vector<2x8x8xf32>
    %252 = arith.mulf %247, %251 : vector<2x8x8xf32>
    "tpu.trace_start"() <{level = 10 : i32, message = "bnm,bmd->bnd"}> : () -> ()
    %cst_81 = arith.constant dense<0.000000e+00> : vector<2x8x8xf32>
    %253 = tpu.matmul %252, %239, %cst_81 {dimension_numbers = #tpu.dot_dimension_numbers<[2], [1], [1], [2], [0, 0, 0, 1, 1, 2], [0], [0]>} : vector<2x8x8xf32>, vector<2x8x8xf32>, vector<2x8x8xf32> -> vector<2x8x8xf32>
    "tpu.trace_stop"() : () -> ()
    %254 = vector.extract_strided_slice %200 {offsets = [0, 0, 24], sizes = [2, 8, 8], strides = [1, 1, 1]} : vector<2x8x32xf32> to vector<2x8x8xf32>
    %255 = vector.extract_strided_slice %201 {offsets = [0, 0, 24], sizes = [2, 8, 8], strides = [1, 1, 1]} : vector<2x8x32xf32> to vector<2x8x8xf32>
    %256 = vector.extract_strided_slice %202 {offsets = [0, 0, 24], sizes = [2, 8, 8], strides = [1, 1, 1]} : vector<2x8x32xf32> to vector<2x8x8xf32>
    "tpu.trace_start"() <{level = 10 : i32, message = "bnd,bmd->bnm"}> : () -> ()
    %cst_82 = arith.constant dense<0.000000e+00> : vector<2x8x8xf32>
    %257 = tpu.matmul %254, %255, %cst_82 {dimension_numbers = #tpu.dot_dimension_numbers<[2], [2], [1], [1], [0, 0, 0, 1, 1, 1], [0], [0]>} : vector<2x8x8xf32>, vector<2x8x8xf32>, vector<2x8x8xf32> -> vector<2x8x8xf32>
    "tpu.trace_stop"() : () -> ()
    %cst_83 = arith.constant 0.353553385 : f32
    %258 = vector.broadcast %cst_83 : f32 to vector<2x8x8xf32>
    %259 = arith.mulf %257, %258 : vector<2x8x8xf32>
    %cst_84 = arith.constant dense<0xFF800000> : vector<2x8xf32>
    %260 = vector.multi_reduction <maximumf>, %259, %cst_84 [2] : vector<2x8x8xf32> to vector<2x8xf32>
    %261 = vector.shape_cast %260 : vector<2x8xf32> to vector<2x8x1xf32>
    %262 = vector.broadcast %261 : vector<2x8x1xf32> to vector<2x8x8xf32>
    %263 = arith.subf %259, %262 : vector<2x8x8xf32>
    %264 = math.exp %263 : vector<2x8x8xf32>
    %cst_85 = arith.constant dense<0.000000e+00> : vector<2x8xf32>
    %265 = vector.multi_reduction <add>, %264, %cst_85 [2] : vector<2x8x8xf32> to vector<2x8xf32>
    %266 = vector.shape_cast %265 : vector<2x8xf32> to vector<2x8x1xf32>
    %267 = tpu.reciprocal %266 {approx = true} : vector<2x8x1xf32> -> vector<2x8x1xf32>
    %268 = vector.broadcast %267 : vector<2x8x1xf32> to vector<2x8x8xf32>
    %269 = arith.mulf %264, %268 : vector<2x8x8xf32>
    "tpu.trace_start"() <{level = 10 : i32, message = "bnm,bmd->bnd"}> : () -> ()
    %cst_86 = arith.constant dense<0.000000e+00> : vector<2x8x8xf32>
    %270 = tpu.matmul %269, %256, %cst_86 {dimension_numbers = #tpu.dot_dimension_numbers<[2], [1], [1], [2], [0, 0, 0, 1, 1, 2], [0], [0]>} : vector<2x8x8xf32>, vector<2x8x8xf32>, vector<2x8x8xf32> -> vector<2x8x8xf32>
    "tpu.trace_stop"() : () -> ()
    %271 = tpu.concatenate %219, %236, %253, %270 in 2 : vector<2x8x8xf32>, vector<2x8x8xf32>, vector<2x8x8xf32>, vector<2x8x8xf32> -> vector<2x8x32xf32>
    %272 = vector.shape_cast %271 : vector<2x8x32xf32> to vector<16x32xf32>
    %c1_87 = arith.constant 1 : index
    %c0_88 = arith.constant 0 : index
    %c0_89 = arith.constant 0 : index
    %273 = vector.load %arg4[%c1_87, %c0_88, %c0_89] : memref<2x32x32xf32, #tpu.memory_space<vmem>>, vector<1x32x32xf32>
    %274 = vector.shape_cast %273 : vector<1x32x32xf32> to vector<32x32xf32>
    %cst_90 = arith.constant dense<0.000000e+00> : vector<16x32xf32>
    %275 = tpu.matmul %272, %274, %cst_90 {dimension_numbers = #tpu.dot_dimension_numbers<[1], [0], [0], [1], [0, 0, 1, 1], [], []>} : vector<16x32xf32>, vector<32x32xf32>, vector<16x32xf32> -> vector<16x32xf32>
    %276 = arith.addf %160, %275 : vector<16x32xf32>
    %277 = vector.broadcast %165 : vector<1x32xf32> to vector<16x32xf32>
    %278 = arith.addf %276, %277 : vector<16x32xf32>
    %cst_91 = arith.constant dense<0.000000e+00> : vector<16xf32>
    %279 = vector.multi_reduction <add>, %278, %cst_91 [1] : vector<16x32xf32> to vector<16xf32>
    %280 = vector.shape_cast %279 : vector<16xf32> to vector<16x1xf32>
    %cst_92 = arith.constant 3.200000e+01 : f32
    %281 = vector.broadcast %cst_92 : f32 to vector<16x1xf32>
    %282 = arith.divf %280, %281 : vector<16x1xf32>
    %283 = vector.broadcast %282 : vector<16x1xf32> to vector<16x32xf32>
    %284 = arith.subf %278, %283 : vector<16x32xf32>
    %285 = arith.mulf %284, %284 : vector<16x32xf32>
    %cst_93 = arith.constant dense<0.000000e+00> : vector<16xf32>
    %286 = vector.multi_reduction <add>, %285, %cst_93 [1] : vector<16x32xf32> to vector<16xf32>
    %287 = vector.shape_cast %286 : vector<16xf32> to vector<16x1xf32>
    %cst_94 = arith.constant 3.200000e+01 : f32
    %288 = vector.broadcast %cst_94 : f32 to vector<16x1xf32>
    %289 = arith.divf %287, %288 : vector<16x1xf32>
    %290 = vector.broadcast %282 : vector<16x1xf32> to vector<16x32xf32>
    %291 = arith.subf %278, %290 : vector<16x32xf32>
    %cst_95 = arith.constant 9.99999974E-6 : f32
    %292 = vector.broadcast %cst_95 : f32 to vector<16x1xf32>
    %293 = arith.addf %289, %292 : vector<16x1xf32>
    %294 = math.rsqrt %293 : vector<16x1xf32>
    %295 = vector.broadcast %294 : vector<16x1xf32> to vector<16x32xf32>
    %296 = arith.mulf %291, %295 : vector<16x32xf32>
    %297 = vector.broadcast %166 : vector<1x32xf32> to vector<16x32xf32>
    %298 = arith.mulf %296, %297 : vector<16x32xf32>
    %299 = vector.broadcast %167 : vector<1x32xf32> to vector<16x32xf32>
    %300 = arith.addf %298, %299 : vector<16x32xf32>
    %c1_96 = arith.constant 1 : index
    %c0_97 = arith.constant 0 : index
    %c0_98 = arith.constant 0 : index
    %301 = vector.load %arg5[%c1_96, %c0_97, %c0_98] : memref<2x32x64xf32, #tpu.memory_space<vmem>>, vector<1x32x64xf32>
    %302 = vector.shape_cast %301 : vector<1x32x64xf32> to vector<32x64xf32>
    %cst_99 = arith.constant dense<0.000000e+00> : vector<16x64xf32>
    %303 = tpu.matmul %300, %302, %cst_99 {dimension_numbers = #tpu.dot_dimension_numbers<[1], [0], [0], [1], [0, 0, 1, 1], [], []>} : vector<16x32xf32>, vector<32x64xf32>, vector<16x64xf32> -> vector<16x64xf32>
    %304 = vector.broadcast %169 : vector<1x64xf32> to vector<16x64xf32>
    %305 = arith.addf %303, %304 : vector<16x64xf32>
    %cst_100 = arith.constant 0.707106769 : f32
    %306 = vector.broadcast %cst_100 : f32 to vector<16x64xf32>
    %307 = arith.mulf %306, %305 : vector<16x64xf32>
    %308 = math.erf %305 : vector<16x64xf32>
    %cst_101 = arith.constant 1.000000e+00 : f32
    %309 = vector.broadcast %cst_101 : f32 to vector<16x64xf32>
    %310 = arith.addf %309, %308 : vector<16x64xf32>
    %311 = arith.mulf %307, %310 : vector<16x64xf32>
    %c1_102 = arith.constant 1 : index
    %c0_103 = arith.constant 0 : index
    %c0_104 = arith.constant 0 : index
    %312 = vector.load %arg6[%c1_102, %c0_103, %c0_104] : memref<2x64x32xf32, #tpu.memory_space<vmem>>, vector<1x64x32xf32>
    %313 = vector.shape_cast %312 : vector<1x64x32xf32> to vector<64x32xf32>
    %cst_105 = arith.constant dense<0.000000e+00> : vector<16x32xf32>
    %314 = tpu.matmul %311, %313, %cst_105 {dimension_numbers = #tpu.dot_dimension_numbers<[1], [0], [0], [1], [0, 0, 1, 1], [], []>} : vector<16x64xf32>, vector<64x32xf32>, vector<16x32xf32> -> vector<16x32xf32>
    %315 = arith.addf %278, %314 : vector<16x32xf32>
    %316 = vector.broadcast %168 : vector<1x32xf32> to vector<16x32xf32>
    %317 = arith.addf %315, %316 : vector<16x32xf32>
    %c2 = arith.constant 2 : index
    %c0_106 = arith.constant 0 : index
    %c0_107 = arith.constant 0 : index
    %318 = vector.load %arg7[%c2, %c0_106, %c0_107] : memref<3x8x64xf32, #tpu.memory_space<vmem>>, vector<1x8x64xf32>
    %319 = vector.shape_cast %318 : vector<1x8x64xf32> to vector<8x64xf32>
    %320 = vector.extract_strided_slice %319 {offsets = [0, 0], sizes = [1, 32], strides = [1, 1]} : vector<8x64xf32> to vector<1x32xf32>
    %321 = vector.extract_strided_slice %319 {offsets = [1, 0], sizes = [1, 32], strides = [1, 1]} : vector<8x64xf32> to vector<1x32xf32>
    %cst_108 = arith.constant dense<0.000000e+00> : vector<16xf32>
    %322 = vector.multi_reduction <add>, %317, %cst_108 [1] : vector<16x32xf32> to vector<16xf32>
    %323 = vector.shape_cast %322 : vector<16xf32> to vector<16x1xf32>
    %cst_109 = arith.constant 3.200000e+01 : f32
    %324 = vector.broadcast %cst_109 : f32 to vector<16x1xf32>
    %325 = arith.divf %323, %324 : vector<16x1xf32>
    %326 = vector.broadcast %325 : vector<16x1xf32> to vector<16x32xf32>
    %327 = arith.subf %317, %326 : vector<16x32xf32>
    %328 = arith.mulf %327, %327 : vector<16x32xf32>
    %cst_110 = arith.constant dense<0.000000e+00> : vector<16xf32>
    %329 = vector.multi_reduction <add>, %328, %cst_110 [1] : vector<16x32xf32> to vector<16xf32>
    %330 = vector.shape_cast %329 : vector<16xf32> to vector<16x1xf32>
    %cst_111 = arith.constant 3.200000e+01 : f32
    %331 = vector.broadcast %cst_111 : f32 to vector<16x1xf32>
    %332 = arith.divf %330, %331 : vector<16x1xf32>
    %333 = vector.broadcast %325 : vector<16x1xf32> to vector<16x32xf32>
    %334 = arith.subf %317, %333 : vector<16x32xf32>
    %cst_112 = arith.constant 9.99999974E-6 : f32
    %335 = vector.broadcast %cst_112 : f32 to vector<16x1xf32>
    %336 = arith.addf %332, %335 : vector<16x1xf32>
    %337 = math.rsqrt %336 : vector<16x1xf32>
    %338 = vector.broadcast %337 : vector<16x1xf32> to vector<16x32xf32>
    %339 = arith.mulf %334, %338 : vector<16x32xf32>
    %340 = vector.broadcast %320 : vector<1x32xf32> to vector<16x32xf32>
    %341 = arith.mulf %339, %340 : vector<16x32xf32>
    %342 = vector.broadcast %321 : vector<1x32xf32> to vector<16x32xf32>
    %343 = arith.addf %341, %342 : vector<16x32xf32>
    %c0_113 = arith.constant 0 : index
    %c0_114 = arith.constant 0 : index
    %344 = vector.load %arg8[%c0_113, %c0_114] : memref<16x32xf32, #tpu.memory_space<vmem>>, vector<16x32xf32>
    tpu.vector_store %arg8[%c0_113, %c0_114], %343 {strides = array<i32>} : memref<16x32xf32, #tpu.memory_space<vmem>>, vector<16x32xf32>,
    return
  }
}

</mosaic_0001>

<bundles_post_ra>
// kernel: transformer_forward.1
= control target key start
LH: loop header
LB: loop body
LE: loop exit
PB: predicated region body
PF: predicated region fallthrough
CT: control target
= control target key end

     0   :  { %13 = vsyncpa [#allocation3], 0  ;;  %s4536_s27 = smov [#allocation2]   ;;  %s5242_s0 = inlined_call_operand.vmem [shape: f32[16,32], index: 0, kind: input, shape index: {}, may-alias: {0,8}]   ;;  %s5243_s1 = inlined_call_operand.vmem [shape: f32[2,16], index: 1, kind: input, shape index: {}]   ;;  %s5244_s2 = inlined_call_operand.hbm [shape: f32[16,64], index: 2, kind: input, shape index: {}]   ;;  %s5245_s3 = inlined_call_operand.vmem [shape: f32[2,32,96], index: 3, kind: input, shape index: {}]   ;;  %s5246_s4 = inlined_call_operand.vmem [shape: f32[2,32,32], index: 4, kind: input, shape index: {}]   ;;  %s5247_s5 = inlined_call_operand.vmem [shape: f32[2,32,64], index: 5, kind: input, shape index: {}]   ;;  %s5248_s6 = inlined_call_operand.vmem [shape: f32[2,64,32], index: 6, kind: input, shape index: {}]   ;;  %s5249_s7 = inlined_call_operand.vmem [shape: f32[3,8,64], index: 7, kind: input, shape index: {}]   ;;  %s5250_s8 = inlined_call_operand.vmem [shape: f32[16,32], index: 8, kind: output, shape index: {}, may-alias: {0,8}]  }
   0x1   :  { %s23_s28 = sshll.u32 %s4536_s27, 4  ;;  %s4512_s9 = scalar_lea.hbm %s5244_s2, 256  ;;  %s24_s28 = int_to_ptr.vmem [resolvable:$true] %s23_s28 }
   0x2   :  { %p4513_p0 = scmp.ne.s32.totalorder %s5244_s2, %s4512_s9  ;;  %p4516_p1 = scmp.lt.u32.totalorder %s4512_s9, %s5244_s2 }
   0x4   :  { %p4518_p2 = pnand %p4516_p1, %p4513_p0 }
   0x6   :  { %4521 = shalt.err (!%p4518_p2)
}
   0x7   :  { %s4522_s14 = scalar_lea.vmem %s24_s28, 256  ;;  %p4527_p4 = scmp.lt.s32.totalorder %s24_s28, %s24_s28 }
   0x8   :  { %p4523_p3 = scmp.ne.s32.totalorder %s24_s28, %s4522_s14  ;;  %p4528_p5 = scmp.lt.s32.totalorder %s4522_s14, %s4522_s14 }
   0xa   :  { %p4529_p6 = por %p4528_p5, %p4527_p4 }
   0xc   :  { %p4530_p7 = pnand %p4529_p6, %p4523_p3 }
   0xe   :  { %4533 = shalt.err (!%p4530_p7)
}
   0xf   :  { %s4537_s15 = smov 128   ;;  %s4538_s16 = smov 8  }
  0x10   :  { %29 = dma.hbm_to_vmem [thread:$0]  %s5244_s2, 256, %s24_s28, [#allocation3], %s4537_s15, %s4537_s15, %s4538_s16  }
  0x11   :  { %4534 = dma.done.wait [#allocation3], 256  }
  0x12   :  { %4535 = vsyncadd [#allocation3], 4294967040  ;;  %vm123_vm0 = vcmask 261120   ;;  %v4617_v0 = vld [vmem:[%s5242_s0] sm:$0xff]  ;;  %v4622_v1 = vld [vmem:[%s5242_s0 + $0x8] sm:$0xff]  ;;  %v4539_v17 = vmov 0.0|0.0   ;;  %v151_v28 = vlaneseq }
  0x13   :  { %v124_v2 = vsel %vm123_vm0, %v4617_v0, 0.0  ;;  %v127_v3 = vsel %vm123_vm0, %v4622_v1, 0.0  ;;  %v46_v14 = vld [vmem:[#allocation2] sm:$0xff]  ;;  %v47_v15 = vld [vmem:[#allocation2 + $0x8] sm:$0xff]  ;;  %4317 = vmatprep.subr.bf16.mxu0 %v4539_v17  ;;  %vm4540_vm1 = vmmov 0   ;;  %v4541_v21 = vmov 0.0  }
  0x14   :  { %125 = vadd.xlane.f32.xlu0 %v124_v2  ;;  %v4318_v16 = vpack.c.bf16 %v47_v15, %v46_v14  ;;  %v163_v18 = vld [vmem:[%s5245_s3] sm:$0xff]  ;;  %v164_v19 = vld [vmem:[%s5245_s3 + $0x8] sm:$0xff]  ;;  %4050 = vmatprep.mubr.msk.f32.mxu0 %vm4540_vm1, %v4541_v21  ;;  %vm48_vm2 = vcmask 130048   ;;  %v165_v23 = vld [vmem:[%s5245_s3 + $0x10] sm:$0xff]  ;;  %v4654_v32 = vshrl.u32 %v151_v28, 7  ;;  %s4542_s10 = smov 96  }
  0x15   :  { %v4320_v20 = vpack.c.bf16 %v164_v19, %v163_v18  ;;  %v45_v22 = vld [vmem:[%s5243_s1] sm:$0x3]  ;;  %4074 = vmatprep.subr.mxu1 %v4541_v21  ;;  %v166_v24 = vld [vmem:[%s5245_s3 + $0x18] sm:$0xff]  ;;  %4076 = vmatprep.mubr.msk.f32.mxu1 %vm4540_vm1, %v4541_v21  ;;  %v4543_v51 = vmov 1966171168   ;;  %vm286_vm3 = vcmask 64512  }
  0x16   :  { %4319 = vmatpush3.bf16.msra.mxu0 %v4318_v16  ;;  %v4324_v25 = vpack.c.bf16 %v166_v24, %v165_v23  ;;  %v4657_v34 = vsub.s32 0, %v4654_v32  ;;  %v4662_v35 = vld [vmem:[%s5249_s7] sm:$0xff]  ;;  %v4665_v36 = vsub.s32 1, %v4654_v32  ;;  %v250_v52 = vunpack.c.l.s4 %v4543_v51  ;;  %s4544_s11 = smov 64   ;;  %s4545_s12 = smov 88  }
  0x17   :  { %4321 = vmatprep.subr.bf16.mxu0 %v4320_v20  ;;  %s4546_s13 = smov 120   ;;  %s4547_s14 = smov 56   ;;  %vm1640_vm4 = vcmask 195584   ;;  %vm1879_vm5 = vcmask 523264  }
  0x18   :  { %128 = vadd.xlane.f32.xlu0 %v127_v3  ;;  %v154_v37 = vrot.slane %v4662_v35, %v4657_v34  ;;  %v160_v40 = vrot.slane %v4662_v35, %v4665_v36  ;;  %v251_v53 = vunpack.c.0.s8 %v250_v52  ;;  %s4548_s15 = smov 80   ;;  %s4549_s17 = smov 112  }
  0x19   :  { %4051 = vmatmul.mubr.msk.f32.vlgmr.msra.gmra.mrb[0].mxu0 %vm48_vm2, %v45_v22  ;;  %s4550_s18 = smov 48   ;;  %s4551_s19 = smov 72  }
  0x1a   :  { %4323 = vmatpush3.bf16.msra.mxu0 %v4320_v20  ;;  %v254_v54 = vsub.s32 %v251_v53, %v4654_v32  ;;  %s4552_s20 = smov 104   ;;  %s4553_s21 = smov 40  }
  0x1b   :  { %4325 = vmatprep.subr.bf16.mxu0 %v4324_v25  ;;  %s4554_s22 = smov 16   ;;  %s4555_s29 = smov 24  }
  0x1e   :  { %4327 = vmatpush3.bf16.msra.mxu0 %v4324_v25 }
  0x1f   :  { %4064 = vmatprep.subr.mxu0 %v4541_v21 }
  0xa1   :  { %v126_v4 = vpop.xlane.xlu0 %125 }
  0xa2   :  { %v131_v5 = vmul.f32 0.03125, %v126_v4 }
  0xa4   :  { %v133_v6 = vsub.f32 %v4617_v0, %v131_v5 }
  0xa5   :  { %v129_v7 = vpop.xlane.xlu0 %128 }
  0xa6   :  { %v132_v8 = vmul.f32 0.03125, %v129_v7  ;;  %v135_v9 = vmul.f32 %v133_v6, %v133_v6 }
  0xa8   :  { %v134_v10 = vsub.f32 %v4622_v1, %v132_v8  ;;  %v137_v11 = vsel %vm123_vm0, %v135_v9, 0.0 }
  0xa9   :  { %138 = vadd.xlane.f32.xlu1 %v137_v11 }
  0xaa   :  { %v136_v12 = vmul.f32 %v134_v10, %v134_v10 }
  0xac   :  { %v140_v13 = vsel %vm123_vm0, %v136_v12, 0.0 }
  0xad   :  { %141 = vadd.xlane.f32.xlu1 %v140_v13 }
  0xec   :  { %v118_v47 = vpop.f32.mrb[0].mxu0 }
  0xed   :  { %v4052_v48 = vpop.f32.mrb[1].mxu0  ;;  %v255_v55 = vrot.slane %v118_v47, %v254_v54 }
  0xef   :  { %v256_v56 = vcombine.high %v255_v55, %v255_v55  ;;  %v263_v57 = vrot.slane %v255_v55, %v254_v54 }
  0xf1   :  { %v270_v58 = vrot.slane %v256_v56, %v254_v54  ;;  %v4685_v59 = vrot.slane %v263_v57, %v4657_v34 }
  0xf3   :  { %v4689_v61 = vrot.slane %v270_v58, %v4657_v34 }
 0x136   :  { %v139_v26 = vpop.xlane.xlu1 %138 }
 0x137   :  { %v143_v27 = vmul.f32 0.03125, %v139_v26 }
 0x139   :  { %v145_v29 = vadd.f32 1e-05, %v143_v27 }
 0x13a   :  { %v142_v30 = vpop.xlane.xlu1 %141 }
 0x13b   :  { %4420 = vrsqrt.f32 %v145_v29  ;;  %v144_v31 = vmul.f32 0.03125, %v142_v30 }
 0x13d   :  { %v146_v33 = vadd.f32 1e-05, %v144_v31 }
 0x13f   :  { %4422 = vrsqrt.f32 %v146_v33 }
 0x145   :  { %v4421_v38 = vpop.eup %4420 }
 0x146   :  { %v149_v39 = vmul.f32 %v4421_v38, %v133_v6 }
 0x148   :  { %v155_v41 = vmul.f32 %v154_v37, %v149_v39 }
 0x149   :  { %v4423_v42 = vpop.eup %4422 }
 0x14a   :  { %v150_v43 = vmul.f32 %v4423_v42, %v134_v10  ;;  %v161_v44 = vadd.f32 %v160_v40, %v155_v41 }
 0x14c   :  { %v156_v45 = vmul.f32 %v154_v37, %v150_v43  ;;  %4061 = vmatprep.mubr.msk.f32.mxu0 %vm123_vm0, %v161_v44 }
 0x14e   :  { %v162_v46 = vadd.f32 %v160_v40, %v156_v45 }
 0x150   :  { %4062 = vmatmul.mubr.msk.f32.vlgmr.msra.gmra.mrb[2].mxu0 %vm123_vm0, %v162_v46 }
 0x151   :  { %4066 = vmatprep.mubr.msk.f32.mxu0 %vm4540_vm1, %v4541_v21 }
 0x223   :  { %v4675_v49 = vpop.f32.mrb[2].mxu0 }
 0x224   :  { %363 = vrot.lane.b32.xlu1 %v4675_v49, %s4542_s10  ;;  %v4679_v50 = vpop.f32.mrb[3].mxu0  ;;  %v4703_v2 = vadd.f32 %v4675_v49, %v4689_v61 }
 0x225   :  { %284 = vrot.lane.b32.xlu0 %v4679_v50, %s4542_s10  ;;  %v4693_v62 = vadd.f32 %v4685_v59, %v4679_v50 }
 0x296   :  { %v364_v63 = vpop.permute.xlu1 %363 }
 0x297   :  { %v285_v60 = vpop.permute.xlu0 %284 }
 0x298   :  { %4065 = vmatpush3.xpose.msk.msra.mxu0 %vm286_vm3, %v285_v60 }
 0x299   :  { %4069 = vmatprep.subr.mxu0 %v4541_v21 }
 0x29b   :  { %4067 = vmatmul.mubr.msk.f32.vlgmr.msra.gmra.mrb[4].mxu0 %vm286_vm3, %v4693_v62 }
 0x29c   :  { %4070 = vmatpush3.xpose.msk.msra.mxu0 %vm286_vm3, %v364_v63  ;;  %4071 = vmatprep.mubr.msk.f32.mxu0 %vm4540_vm1, %v4541_v21 }
 0x29d   :  { %4089 = vmatprep.subr.mxu0 %v4541_v21 }
 0x29f   :  { %4072 = vmatmul.mubr.msk.f32.vlgmr.msra.gmra.mrb[6].mxu0 %vm286_vm3, %v4703_v2 }
 0x2a0   :  { %4091 = vmatprep.mubr.msk.f32.mxu0 %vm4540_vm1, %v4541_v21 }
 0x36e   :  { %v358_v3 = vpop.f32.mrb[4].mxu0 }
 0x36f   :  { %v440_v4 = vmul.f32 0.35355338, %v358_v3  ;;  %v4068_v5 = vpop.f32.mrb[5].mxu0 }
 0x371   :  { %v442_v6 = vsel %vm286_vm3, %v440_v4, -inf }
 0x372   :  { %443 = vmax.xlane.f32.xlu1 %v442_v6  ;;  %v436_v7 = vpop.f32.mrb[6].mxu0 }
 0x373   :  { %v441_v8 = vmul.f32 0.35355338, %v436_v7  ;;  %v4073_v9 = vpop.f32.mrb[7].mxu0 }
 0x375   :  { %v445_v10 = vsel %vm286_vm3, %v441_v8, -inf }
 0x376   :  { %446 = vmax.xlane.f32.xlu0 %v445_v10 }
 0x383   :  { %540 = vrot.lane.b32.xlu1 %v4675_v49, %s4544_s11 }
 0x387   :  { %618 = vrot.lane.b32.xlu1 %v4679_v50, %s4545_s12 }
 0x38b   :  { %696 = vrot.lane.b32.xlu1 %v4675_v49, %s4545_s12 }
 0x3ff   :  { %v444_v11 = vpop.xlane.xlu1 %443 }
 0x400   :  { %v448_v12 = vsub.f32 %v440_v4, %v444_v11 }
 0x402   :  { %v450_v13 = vmul.f32 1.442695, %v448_v12 }
 0x403   :  { %v541_v14 = vpop.permute.xlu1 %540  ;;  %v447_v15 = vpop.xlane.xlu0 %446 }
 0x404   :  { %4424 = vpow2.f32 %v450_v13  ;;  %v449_v16 = vsub.f32 %v441_v8, %v447_v15 }
 0x406   :  { %v452_v17 = vmul.f32 1.442695, %v449_v16 }
 0x407   :  { %v619_v18 = vpop.permute.xlu1 %618 }
 0x408   :  { %4426 = vpow2.f32 %v452_v17 }
 0x40b   :  { %v697_v19 = vpop.permute.xlu1 %696 }
 0x40c   :  { %4090 = vmatpush3.xpose.msk.msra.mxu0 %vm286_vm3, %v697_v19 }
 0x40d   :  { %4099 = vmatprep.subr.mxu0 %v4541_v21 }
 0x40e   :  { %v4425_v20 = vpop.eup %4424 }
 0x40f   :  { %v454_v22 = vsel %vm286_vm3, %v4425_v20, 0.0 }
 0x410   :  { %455 = vadd.xlane.f32.xlu0 %v454_v22 }
 0x412   :  { %v4427_v23 = vpop.eup %4426 }
 0x413   :  { %v457_v24 = vsel %vm286_vm3, %v4427_v23, 0.0 }
 0x414   :  { %458 = vadd.xlane.f32.xlu1 %v457_v24 }
 0x425   :  { %694 = vrot.lane.b32.xlu1 %v4703_v2, %s4546_s13 }
 0x426   :  { %464 = vrot.lane.b32.xlu0 %v4679_v50, %s4544_s11 }
 0x42a   :  { %616 = vrot.lane.b32.xlu0 %v4693_v62, %s4546_s13 }
 0x49d   :  { %v456_v25 = vpop.xlane.xlu0 %455 }
 0x49e   :  { %4428 = vrcp.f32 %v456_v25 }
 0x4a1   :  { %v459_v26 = vpop.xlane.xlu1 %458  ;;  %v465_v27 = vpop.permute.xlu0 %464 }
 0x4a2   :  { %4430 = vrcp.f32 %v459_v26  ;;  %4075 = vmatpush3.msra.mxu1 %v465_v27 }
 0x4a3   :  { %4079 = vmatprep.subr.mxu1 %v4541_v21 }
 0x4a5   :  { %v695_v28 = vpop.permute.xlu1 %694  ;;  %v617_v37 = vpop.permute.xlu0 %616 }
 0x4a6   :  { %4092 = vmatmul.mubr.msk.f32.vlgmr.msra.gmra.mrb[8].mxu0 %vm286_vm3, %v695_v28 }
 0x4a7   :  { %4101 = vmatprep.mubr.msk.f32.mxu0 %vm4540_vm1, %v4541_v21 }
 0x4a8   :  { %v4429_v29 = vpop.eup %4428 }
 0x4a9   :  { %v462_v30 = vmul.f32 %v4429_v29, %v4425_v20 }
 0x4ab   :  { %4077 = vmatmul.mubr.msk.f32.vlgmr.msra.gmra.mrb[0].mxu1 %vm286_vm3, %v462_v30 }
 0x4ac   :  { %v4431_v31 = vpop.eup %4430  ;;  %4080 = vmatpush3.msra.mxu1 %v541_v14  ;;  %4081 = vmatprep.mubr.msk.f32.mxu1 %vm4540_vm1, %v4541_v21 }
 0x4ad   :  { %v463_v33 = vmul.f32 %v4431_v31, %v4427_v23  ;;  %4084 = vmatprep.subr.mxu1 %v4541_v21 }
 0x4af   :  { %4082 = vmatmul.mubr.msk.f32.vlgmr.msra.gmra.mrb[2].mxu1 %vm286_vm3, %v463_v33 }
 0x4b0   :  { %4086 = vmatprep.mubr.msk.f32.mxu1 %vm4540_vm1, %v4541_v21 }
 0x4b3   :  { %4085 = vmatpush3.xpose.msk.msra.mxu1 %vm286_vm3, %v619_v18 }
 0x4b4   :  { %4094 = vmatprep.subr.mxu1 %v4541_v21 }
 0x4b6   :  { %4087 = vmatmul.mubr.msk.f32.vlgmr.msra.gmra.mrb[4].mxu1 %vm286_vm3, %v617_v37 }
 0x4b7   :  { %4096 = vmatprep.mubr.msk.f32.mxu1 %vm4540_vm1, %v4541_v21 }
 0x579   :  { %v768_v38 = vpop.f32.mrb[8].mxu0 }
 0x57a   :  { %v773_v39 = vmul.f32 0.35355338, %v768_v38  ;;  %v4093_v40 = vpop.f32.mrb[9].mxu0 }
 0x57c   :  { %v777_v41 = vsel %vm286_vm3, %v773_v39, -inf }
 0x57d   :  { %778 = vmax.xlane.f32.xlu1 %v777_v41 }
 0x57e   :  { %v4745_v42 = vpop.f32.mrb[0].mxu1 }
 0x57f   :  { %v4078_v43 = vpop.f32.mrb[1].mxu1 }
 0x582   :  { %v4747_v44 = vpop.f32.mrb[2].mxu1 }
 0x583   :  { %v4083_v45 = vpop.f32.mrb[3].mxu1 }
 0x589   :  { %v690_v46 = vpop.f32.mrb[4].mxu1 }
 0x58a   :  { %v772_v47 = vmul.f32 0.35355338, %v690_v46  ;;  %v4088_v48 = vpop.f32.mrb[5].mxu1 }
 0x58c   :  { %v774_v51 = vsel %vm286_vm3, %v772_v47, -inf }
 0x58d   :  { %775 = vmax.xlane.f32.xlu0 %v774_v51 }
 0x58e   :  { %872 = vrot.lane.b32.xlu1 %v4675_v49, %s4547_s14 }
 0x592   :  { %950 = vrot.lane.b32.xlu1 %v4679_v50, %s4548_s15 }
 0x596   :  { %1028 = vrot.lane.b32.xlu1 %v4675_v49, %s4548_s15 }
 0x59a   :  { %1026 = vrot.lane.b32.xlu1 %v4703_v2, %s4549_s17 }
 0x60a   :  { %v779_v52 = vpop.xlane.xlu1 %778 }
 0x60b   :  { %v781_v53 = vsub.f32 %v773_v39, %v779_v52 }
 0x60d   :  { %v784_v54 = vmul.f32 1.442695, %v781_v53 }
 0x60e   :  { %v873_v55 = vpop.permute.xlu1 %872 }
 0x60f   :  { %4432 = vpow2.f32 %v784_v54  ;;  %4100 = vmatpush3.msra.mxu0 %v873_v55 }
 0x610   :  { %4109 = vmatprep.subr.mxu0 %v4541_v21 }
 0x612   :  { %v951_v7 = vpop.permute.xlu1 %950 }
 0x616   :  { %v1029_v9 = vpop.permute.xlu1 %1028 }
 0x619   :  { %v4433_v56 = vpop.eup %4432 }
 0x61a   :  { %v789_v57 = vsel %vm286_vm3, %v4433_v56, 0.0  ;;  %v776_v58 = vpop.xlane.xlu0 %775  ;;  %v1027_v11 = vpop.permute.xlu1 %1026 }
 0x61b   :  { %790 = vadd.xlane.f32.xlu0 %v789_v57  ;;  %v780_v60 = vsub.f32 %v772_v47, %v776_v58 }
 0x61d   :  { %v782_v63 = vmul.f32 1.442695, %v780_v60 }
 0x61f   :  { %4434 = vpow2.f32 %v782_v63 }
 0x629   :  { %v4435_v3 = vpop.eup %4434 }
 0x62a   :  { %v786_v4 = vsel %vm286_vm3, %v4435_v3, 0.0 }
 0x631   :  { %796 = vrot.lane.b32.xlu0 %v4679_v50, %s4547_s14 }
 0x650   :  { %787 = vadd.xlane.f32.xlu0 %v786_v4 }
 0x666   :  { %948 = vrot.lane.b32.xlu0 %v4693_v62, %s4549_s17 }
 0x6a8   :  { %v791_v5 = vpop.xlane.xlu0 %790 }
 0x6a9   :  { %4436 = vrcp.f32 %v791_v5 }
 0x6ac   :  { %v797_v6 = vpop.permute.xlu0 %796 }
 0x6ad   :  { %4095 = vmatpush3.msra.mxu1 %v797_v6 }
 0x6ae   :  { %4104 = vmatprep.subr.mxu1 %v4541_v21 }
 0x6b3   :  { %v4437_v8 = vpop.eup %4436 }
 0x6b4   :  { %v795_v10 = vmul.f32 %v4437_v8, %v4433_v56 }
 0x6b6   :  { %4102 = vmatmul.mubr.msk.f32.vlgmr.msra.gmra.mrb[10].mxu0 %vm286_vm3, %v795_v10 }
 0x6b7   :  { %4110 = vmatpush3.xpose.msk.msra.mxu0 %vm286_vm3, %v1029_v9  ;;  %4111 = vmatprep.mubr.msk.f32.mxu0 %vm4540_vm1, %v4541_v21 }
 0x6b8   :  { %4119 = vmatprep.subr.mxu0 %v4541_v21 }
 0x6ba   :  { %4112 = vmatmul.mubr.msk.f32.vlgmr.msra.gmra.mrb[12].mxu0 %vm286_vm3, %v1027_v11 }
 0x6bb   :  { %4121 = vmatprep.mubr.msk.f32.mxu0 %vm4540_vm1, %v4541_v21 }
 0x6dd   :  { %v788_v12 = vpop.xlane.xlu0 %787 }
 0x6de   :  { %4438 = vrcp.f32 %v788_v12 }
 0x6e1   :  { %v949_v15 = vpop.permute.xlu0 %948 }
 0x6e8   :  { %v4439_v13 = vpop.eup %4438 }
 0x6e9   :  { %v794_v14 = vmul.f32 %v4439_v13, %v4435_v3 }
 0x6eb   :  { %4097 = vmatmul.mubr.msk.f32.vlgmr.msra.gmra.mrb[6].mxu1 %vm286_vm3, %v794_v14 }
 0x6ec   :  { %4105 = vmatpush3.xpose.msk.msra.mxu1 %vm286_vm3, %v951_v7  ;;  %4106 = vmatprep.mubr.msk.f32.mxu1 %vm4540_vm1, %v4541_v21 }
 0x6ed   :  { %4114 = vmatprep.subr.mxu1 %v4541_v21 }
 0x6ef   :  { %4107 = vmatmul.mubr.msk.f32.vlgmr.msra.gmra.mrb[8].mxu1 %vm286_vm3, %v949_v15 }
 0x6f0   :  { %4116 = vmatprep.mubr.msk.f32.mxu1 %vm4540_vm1, %v4541_v21 }
 0x789   :  { %v4782_v16 = vpop.f32.mrb[10].mxu0 }
 0x78a   :  { %v4103_v17 = vpop.f32.mrb[11].mxu0 }
 0x78d   :  { %v1100_v18 = vpop.f32.mrb[12].mxu0 }
 0x78e   :  { %v1105_v19 = vmul.f32 0.35355338, %v1100_v18  ;;  %v4113_v20 = vpop.f32.mrb[13].mxu0 }
 0x790   :  { %v1109_v22 = vsel %vm286_vm3, %v1105_v19, -inf }
 0x791   :  { %1110 = vmax.xlane.f32.xlu1 %v1109_v22 }
 0x7a2   :  { %1204 = vrot.lane.b32.xlu1 %v4675_v49, %s4550_s18 }
 0x7a6   :  { %1282 = vrot.lane.b32.xlu1 %v4679_v50, %s4551_s19 }
 0x7aa   :  { %1360 = vrot.lane.b32.xlu1 %v4675_v49, %s4551_s19 }
 0x7ae   :  { %1358 = vrot.lane.b32.xlu1 %v4703_v2, %s4552_s20 }
 0x7be   :  { %v868_v23 = vpop.f32.mrb[6].mxu1 }
 0x7bf   :  { %v4098_v24 = vpop.f32.mrb[7].mxu1 }
 0x7c2   :  { %v1022_v25 = vpop.f32.mrb[8].mxu1 }
 0x7c3   :  { %v1104_v26 = vmul.f32 0.35355338, %v1022_v25  ;;  %v4108_v27 = vpop.f32.mrb[9].mxu1 }
 0x7c5   :  { %v1106_v28 = vsel %vm286_vm3, %v1104_v26, -inf }
 0x7c6   :  { %1107 = vmax.xlane.f32.xlu0 %v1106_v28 }
 0x81e   :  { %v1111_v29 = vpop.xlane.xlu1 %1110 }
 0x81f   :  { %v1113_v30 = vsub.f32 %v1105_v19, %v1111_v29  ;;  %v1644_v29 = vld [vmem:[%s5246_s4 + $0x8] sm:$0xff] }
 0x821   :  { %v1116_v31 = vmul.f32 1.442695, %v1113_v30  ;;  %v1645_v30 = vld [vmem:[%s5246_s4 + $0x10] sm:$0xff] }
 0x822   :  { %v1205_v33 = vpop.permute.xlu1 %1204 }
 0x823   :  { %4440 = vpow2.f32 %v1116_v31  ;;  %4120 = vmatpush3.msra.mxu0 %v1205_v33  ;;  %v1646_v33 = vld [vmem:[%s5246_s4 + $0x18] sm:$0xff] }
 0x824   :  { %4129 = vmatprep.subr.mxu0 %v4541_v21 }
 0x826   :  { %v1283_v47 = vpop.permute.xlu1 %1282 }
 0x82a   :  { %v1361_v51 = vpop.permute.xlu1 %1360 }
 0x82d   :  { %v4441_v37 = vpop.eup %4440 }
 0x82e   :  { %v1121_v38 = vsel %vm286_vm3, %v4441_v37, 0.0 }
 0x82f   :  { %1122 = vadd.xlane.f32.xlu0 %v1121_v38 }
 0x845   :  { %1128 = vrot.lane.b32.xlu0 %v4679_v50, %s4550_s18 }
 0x853   :  { %v1108_v2 = vpop.xlane.xlu0 %1107 }
 0x854   :  { %v1112_v39 = vsub.f32 %v1104_v26, %v1108_v2 }
 0x856   :  { %v1114_v40 = vmul.f32 1.442695, %v1112_v39 }
 0x858   :  { %4442 = vpow2.f32 %v1114_v40 }
 0x862   :  { %v4443_v41 = vpop.eup %4442 }
 0x863   :  { %v1118_v43 = vsel %vm286_vm3, %v4443_v41, 0.0 }
 0x864   :  { %1119 = vadd.xlane.f32.xlu0 %v1118_v43 }
 0x87a   :  { %1280 = vrot.lane.b32.xlu0 %v4693_v62, %s4552_s20  ;;  %v1359_v62 = vpop.permute.xlu1 %1358 }
 0x8bc   :  { %v1123_v45 = vpop.xlane.xlu0 %1122 }
 0x8bd   :  { %4444 = vrcp.f32 %v1123_v45 }
 0x8c0   :  { %v1129_v46 = vpop.permute.xlu0 %1128 }
 0x8c1   :  { %4115 = vmatpush3.msra.mxu1 %v1129_v46 }
 0x8c2   :  { %4124 = vmatprep.subr.mxu1 %v4541_v21 }
 0x8c7   :  { %v4445_v48 = vpop.eup %4444 }
 0x8c8   :  { %v1127_v52 = vmul.f32 %v4445_v48, %v4441_v37  ;;  %v4332_v37 = vpack.c.bf16 %v1646_v33, %v1645_v30 }
 0x8ca   :  { %4122 = vmatmul.mubr.msk.f32.vlgmr.msra.gmra.mrb[14].mxu0 %vm286_vm3, %v1127_v52 }
 0x8cb   :  { %4130 = vmatpush3.xpose.msk.msra.mxu0 %vm286_vm3, %v1361_v51  ;;  %4131 = vmatprep.mubr.msk.f32.mxu0 %vm4540_vm1, %v4541_v21 }
 0x8cc   :  { %4139 = vmatprep.subr.mxu0 %v4541_v21 }
 0x8ce   :  { %4132 = vmatmul.mubr.msk.f32.vlgmr.msra.gmra.mrb[16].mxu0 %vm286_vm3, %v1359_v62 }
 0x8cf   :  { %4141 = vmatprep.mubr.msk.f32.mxu0 %vm4540_vm1, %v4541_v21 }
 0x8f1   :  { %v1120_v53 = vpop.xlane.xlu0 %1119 }
 0x8f2   :  { %4446 = vrcp.f32 %v1120_v53 }
 0x8f5   :  { %v1281_v56 = vpop.permute.xlu0 %1280 }
 0x8fc   :  { %v4447_v54 = vpop.eup %4446 }
 0x8fd   :  { %v1126_v55 = vmul.f32 %v4447_v54, %v4443_v41 }
 0x8ff   :  { %4117 = vmatmul.mubr.msk.f32.vlgmr.msra.gmra.mrb[10].mxu1 %vm286_vm3, %v1126_v55 }
 0x900   :  { %4125 = vmatpush3.xpose.msk.msra.mxu1 %vm286_vm3, %v1283_v47  ;;  %4126 = vmatprep.mubr.msk.f32.mxu1 %vm4540_vm1, %v4541_v21 }
 0x901   :  { %4134 = vmatprep.subr.mxu1 %v4541_v21 }
 0x903   :  { %4127 = vmatmul.mubr.msk.f32.vlgmr.msra.gmra.mrb[12].mxu1 %vm286_vm3, %v1281_v56 }
 0x904   :  { %4136 = vmatprep.mubr.msk.f32.mxu1 %vm4540_vm1, %v4541_v21 }
 0x99d   :  { %v1276_v57 = vpop.f32.mrb[14].mxu0 }
 0x99e   :  { %v4123_v58 = vpop.f32.mrb[15].mxu0 }
 0x9a1   :  { %v1432_v60 = vpop.f32.mrb[16].mxu0 }
 0x9a2   :  { %v1437_v63 = vmul.f32 0.35355338, %v1432_v60  ;;  %v4133_v3 = vpop.f32.mrb[17].mxu0 }
 0x9a4   :  { %v1441_v4 = vsel %vm286_vm3, %v1437_v63, -inf }
 0x9a5   :  { %1442 = vmax.xlane.f32.xlu1 %v1441_v4 }
 0x9b6   :  { %1536 = vrot.lane.b32.xlu1 %v4675_v49, %s4553_s21 }
 0x9ba   :  { %1614 = vrot.lane.b32.xlu1 %v868_v23, %s4538_s16 }
 0x9be   :  { %1616 = vrot.lane.b32.xlu1 %v4782_v16, %s4538_s16 }
 0x9c2   :  { %1624 = vrot.lane.b32.xlu1 %v1276_v57, %s4554_s22 }
 0x9d2   :  { %v1200_v5 = vpop.f32.mrb[10].mxu1 }
 0x9d3   :  { %v4118_v6 = vpop.f32.mrb[11].mxu1 }
 0x9d6   :  { %v1354_v7 = vpop.f32.mrb[12].mxu1 }
 0x9d7   :  { %v1436_v8 = vmul.f32 0.35355338, %v1354_v7  ;;  %v4128_v9 = vpop.f32.mrb[13].mxu1 }
 0x9d9   :  { %v1438_v10 = vsel %vm286_vm3, %v1436_v8, -inf }
 0x9da   :  { %1439 = vmax.xlane.f32.xlu0 %v1438_v10 }
 0xa32   :  { %v1443_v11 = vpop.xlane.xlu1 %1442 }
 0xa33   :  { %v1445_v12 = vsub.f32 %v1437_v63, %v1443_v11 }
 0xa35   :  { %v1448_v13 = vmul.f32 1.442695, %v1445_v12 }
 0xa36   :  { %v1537_v49 = vpop.permute.xlu1 %1536 }
 0xa37   :  { %4448 = vpow2.f32 %v1448_v13  ;;  %4140 = vmatpush3.msra.mxu0 %v1537_v49  ;;  %v1774_v49 = vld [vmem:[%s5247_s5] sm:$0xff] }
 0xa3a   :  { %v1615_v41 = vpop.permute.xlu1 %1614 }
 0xa3b   :  { %v1636_v47 = vsel %vm286_vm3, %v4745_v42, %v1615_v41  ;;  %v1732_v42 = vsub.s32 2, %v4654_v32  ;;  %v1872_v41 = vld [vmem:[%s5248_s6 + $0x8] sm:$0xff] }
 0xa3d   :  { %v1733_v56 = vrot.slane %v4662_v35, %v1732_v42 }
 0xa3e   :  { %v1617_v43 = vpop.permute.xlu1 %1616 }
 0xa3f   :  { %v1637_v51 = vsel %vm286_vm3, %v4747_v44, %v1617_v43 }
 0xa41   :  { %v4449_v14 = vpop.eup %4448 }
 0xa42   :  { %v1453_v15 = vsel %vm286_vm3, %v4449_v14, 0.0  ;;  %v1625_v45 = vpop.permute.xlu1 %1624 }
 0xa43   :  { %1454 = vadd.xlane.f32.xlu0 %v1453_v15  ;;  %v1639_v53 = vsel %vm48_vm2, %v1637_v51, %v1625_v45  ;;  %v1873_v45 = vld [vmem:[%s5248_s6 + $0x10] sm:$0xff]  ;;  %v1876_v51 = vld [vmem:[%s5248_s6 + $0x28] sm:$0xff] }
 0xa67   :  { %v1440_v16 = vpop.xlane.xlu0 %1439 }
 0xa68   :  { %v1444_v17 = vsub.f32 %v1436_v8, %v1440_v16  ;;  %v1776_v16 = vld [vmem:[%s5247_s5 + $0x10] sm:$0xff] }
 0xa6a   :  { %v1446_v18 = vmul.f32 1.442695, %v1444_v17  ;;  %v1777_v17 = vld [vmem:[%s5247_s5 + $0x18] sm:$0xff] }
 0xa6c   :  { %4450 = vpow2.f32 %v1446_v18  ;;  %v4340_v18 = vpack.c.bf16 %v1777_v17, %v1776_v16 }
 0xa76   :  { %v4451_v19 = vpop.eup %4450 }
 0xa77   :  { %v1450_v20 = vsel %vm286_vm3, %v4451_v19, 0.0 }
 0xa78   :  { %1451 = vadd.xlane.f32.xlu0 %v1450_v20 }
 0xa8e   :  { %1460 = vrot.lane.b32.xlu0 %v4679_v50, %s4553_s21  ;;  %v1643_v50 = vld [vmem:[%s5246_s4] sm:$0xff] }
 0xa8f   :  { %v4328_v31 = vpack.c.bf16 %v1644_v29, %v1643_v50 }
 0xa92   :  { %1622 = vrot.lane.b32.xlu0 %v1200_v5, %s4554_s22 }
 0xad0   :  { %v1455_v22 = vpop.xlane.xlu0 %1454 }
 0xad1   :  { %4452 = vrcp.f32 %v1455_v22 }
 0xadb   :  { %v4453_v23 = vpop.eup %4452 }
 0xadc   :  { %v1459_v24 = vmul.f32 %v4453_v23, %v4449_v14  ;;  %v1775_v14 = vld [vmem:[%s5247_s5 + $0x8] sm:$0xff] }
 0xadd   :  { %v4336_v15 = vpack.c.bf16 %v1775_v14, %v1774_v49 }
 0xade   :  { %4142 = vmatmul.mubr.msk.f32.vlgmr.msra.gmra.mrb[18].mxu0 %vm286_vm3, %v1459_v24 }
 0xadf   :  { %4337 = vmatprep.subr.bf16.mxu0 %v4336_v15 }
 0xae0   :  { %4339 = vmatpush3.bf16.msra.mxu0 %v4336_v15 }
 0xae1   :  { %4341 = vmatprep.subr.bf16.mxu0 %v4340_v18 }
 0xae4   :  { %4343 = vmatpush3.bf16.msra.mxu0 %v4340_v18 }
 0xb05   :  { %v1452_v25 = vpop.xlane.xlu0 %1451 }
 0xb06   :  { %4454 = vrcp.f32 %v1452_v25 }
 0xb09   :  { %v1461_v26 = vpop.permute.xlu0 %1460 }
 0xb0a   :  { %4135 = vmatpush3.msra.mxu1 %v1461_v26  ;;  %v1764_v26 = vsub.s32 3, %v4654_v32 }
 0xb0b   :  { %4329 = vmatprep.subr.bf16.mxu1 %v4328_v31 }
 0xb0d   :  { %v1623_v46 = vpop.permute.xlu0 %1622 }
 0xb0e   :  { %v1638_v52 = vsel %vm48_vm2, %v1636_v47, %v1623_v46  ;;  %v1874_v46 = vld [vmem:[%s5248_s6 + $0x18] sm:$0xff] }
 0xb0f   :  { %v4348_v47 = vpack.c.bf16 %v1874_v46, %v1873_v45 }
 0xb10   :  { %v4455_v27 = vpop.eup %4454 }
 0xb11   :  { %v1458_v28 = vmul.f32 %v4455_v27, %v4451_v19  ;;  %v1770_v27 = vsub.s32 4, %v4654_v32 }
 0xb13   :  { %4137 = vmatmul.mubr.msk.f32.vlgmr.msra.gmra.mrb[14].mxu1 %vm286_vm3, %v1458_v28  ;;  %v1765_v28 = vrot.slane %v4662_v35, %v1764_v26  ;;  %v1771_v30 = vrot.slane %v4662_v35, %v1770_v27 }
 0xb14   :  { %4331 = vmatpush3.bf16.msra.mxu1 %v4328_v31 }
 0xb15   :  { %4333 = vmatprep.subr.bf16.mxu1 %v4332_v37 }
 0xb18   :  { %4335 = vmatpush3.bf16.msra.mxu1 %v4332_v37 }
 0xbb1   :  { %v1608_v38 = vpop.f32.mrb[18].mxu0 }
 0xbb2   :  { %1632 = vrot.lane.b32.xlu1 %v1608_v38, %s4555_s29  ;;  %v4143_v2 = vpop.f32.mrb[19].mxu0 }
 0xbe6   :  { %v1532_v39 = vpop.f32.mrb[14].mxu1 }
 0xbe7   :  { %1630 = vrot.lane.b32.xlu0 %v1532_v39, %s4555_s29  ;;  %v4138_v40 = vpop.f32.mrb[15].mxu1 }
 0xbe8   :  { %v1871_v40 = vld [vmem:[%s5248_s6] sm:$0xff] }
 0xbe9   :  { %v4344_v43 = vpack.c.bf16 %v1872_v41, %v1871_v40 }
 0xbeb   :  { %4345 = vmatprep.subr.bf16.mxu1 %v4344_v43 }
 0xc24   :  { %v1633_v48 = vpop.permute.xlu1 %1632 }
 0xc25   :  { %v1642_v55 = vsel %vm1640_vm4, %v1639_v53, %v1633_v48  ;;  %v1875_v48 = vld [vmem:[%s5248_s6 + $0x20] sm:$0xff]  ;;  %v1878_v53 = vld [vmem:[%s5248_s6 + $0x38] sm:$0xff] }
 0xc59   :  { %v1631_v62 = vpop.permute.xlu0 %1630 }
 0xc5a   :  { %v1641_v54 = vsel %vm1640_vm4, %v1638_v52, %v1631_v62  ;;  %v4352_v52 = vpack.c.bf16 %v1876_v51, %v1875_v48  ;;  %v1877_v62 = vld [vmem:[%s5248_s6 + $0x30] sm:$0xff] }
 0xc5b   :  { %4152 = vmatprep.mubr.msk.f32.mxu1 %vm123_vm0, %v1641_v54  ;;  %v4356_v54 = vpack.c.bf16 %v1878_v53, %v1877_v62 }
 0xc5c   :  { %4153 = vmatmul.mubr.msk.f32.vlgmr.msra.gmra.mrb[16].mxu1 %vm123_vm0, %v1642_v55  ;;  %v1780_v55 = vsub.s32 6, %v4654_v32 }
 0xc5d   :  { %4347 = vmatpush3.bf16.msra.mxu1 %v4344_v43  ;;  %v4966_v43 = vld [vmem:[%s5249_s7 + $0x8] sm:$0xff] }
 0xc5e   :  { %4349 = vmatprep.subr.bf16.mxu1 %v4348_v47  ;;  %v2000_v45 = vrot.slane %v4966_v43, %v4657_v34 }
 0xc61   :  { %4351 = vmatpush3.bf16.msra.mxu1 %v4348_v47 }
 0xc62   :  { %4353 = vmatprep.subr.bf16.mxu1 %v4352_v52 }
 0xc65   :  { %4355 = vmatpush3.bf16.msra.mxu1 %v4352_v52  ;;  %v2006_v52 = vrot.slane %v4966_v43, %v4665_v36 }
 0xc66   :  { %4357 = vmatprep.subr.bf16.mxu1 %v4356_v54 }
 0xc69   :  { %4359 = vmatpush3.bf16.msra.mxu1 %v4356_v54 }
 0xc6a   :  { %4206 = vmatprep.subr.mxu1 %v4541_v21 }
 0xd2f   :  { %v4154_v44 = vpop.f32.mrb[16].mxu1 }
 0xd30   :  { %v1729_v57 = vadd.f32 %v4154_v44, %v4622_v1  ;;  %v1719_v58 = vpop.f32.mrb[17].mxu1 }
 0xd31   :  { %v1728_v60 = vadd.f32 %v1719_v58, %v4617_v0 }
 0xd32   :  { %v4863_v63 = vadd.f32 %v1733_v56, %v1729_v57 }
 0xd33   :  { %v4865_v3 = vadd.f32 %v1733_v56, %v1728_v60  ;;  %v1781_v56 = vrot.slane %v4662_v35, %v1780_v55 }
 0xd34   :  { %v1739_v4 = vsel %vm123_vm0, %v4863_v63, 0.0 }
 0xd35   :  { %1740 = vadd.xlane.f32.xlu1 %v1739_v4  ;;  %v1736_v5 = vsel %vm123_vm0, %v4865_v3, 0.0 }
 0xd36   :  { %1737 = vadd.xlane.f32.xlu0 %v1736_v5 }
 0xdc2   :  { %v1741_v6 = vpop.xlane.xlu1 %1740 }
 0xdc3   :  { %v1743_v7 = vmul.f32 0.03125, %v1741_v6  ;;  %v1738_v8 = vpop.xlane.xlu0 %1737 }
 0xdc4   :  { %v1742_v9 = vmul.f32 0.03125, %v1738_v8 }
 0xdc5   :  { %v1745_v1 = vsub.f32 %v4863_v63, %v1743_v7 }
 0xdc6   :  { %v1744_v0 = vsub.f32 %v4865_v3, %v1742_v9 }
 0xdc7   :  { %v1747_v12 = vmul.f32 %v1745_v1, %v1745_v1 }
 0xdc8   :  { %v1746_v10 = vmul.f32 %v1744_v0, %v1744_v0 }
 0xdc9   :  { %v1751_v13 = vsel %vm123_vm0, %v1747_v12, 0.0 }
 0xdca   :  { %v1748_v11 = vsel %vm123_vm0, %v1746_v10, 0.0  ;;  %v1965_v10 = vsub.s32 5, %v4654_v32 }
 0xdcb   :  { %1749 = vadd.xlane.f32.xlu0 %v1748_v11 }
 0xdcc   :  { %v1966_v11 = vrot.slane %v4662_v35, %v1965_v10 }
 0xdcf   :  { %1752 = vadd.xlane.f32.xlu0 %v1751_v13 }
 0xe58   :  { %v1750_v19 = vpop.xlane.xlu0 %1749 }
 0xe59   :  { %v1754_v20 = vmul.f32 0.03125, %v1750_v19 }
 0xe5b   :  { %v1756_v22 = vadd.f32 1e-05, %v1754_v20 }
 0xe5c   :  { %v1753_v23 = vpop.xlane.xlu0 %1752 }
 0xe5d   :  { %4456 = vrsqrt.f32 %v1756_v22  ;;  %v1755_v24 = vmul.f32 0.03125, %v1753_v23 }
 0xe5f   :  { %v1757_v25 = vadd.f32 1e-05, %v1755_v24 }
 0xe61   :  { %4458 = vrsqrt.f32 %v1757_v25 }
 0xe67   :  { %v4457_v50 = vpop.eup %4456 }
 0xe68   :  { %v1760_v29 = vmul.f32 %v4457_v50, %v1744_v0  ;;  %v3870_v50 = vld [vmem:[%s5245_s3 + $0x20] sm:$0xff] }
 0xe6a   :  { %v1766_v31 = vmul.f32 %v1765_v28, %v1760_v29  ;;  %v3871_v29 = vld [vmem:[%s5245_s3 + $0x28] sm:$0xff] }
 0xe6b   :  { %v4459_v33 = vpop.eup %4458 }
 0xe6c   :  { %v1761_v37 = vmul.f32 %v4459_v33, %v1745_v1  ;;  %v1772_v38 = vadd.f32 %v1771_v30, %v1766_v31  ;;  %v3872_v31 = vld [vmem:[%s5245_s3 + $0x30] sm:$0xff]  ;;  %v3873_v33 = vld [vmem:[%s5245_s3 + $0x38] sm:$0xff] }
 0xe6e   :  { %v1767_v2 = vmul.f32 %v1765_v28, %v1761_v37  ;;  %4163 = vmatprep.mubr.msk.f32.mxu0 %vm123_vm0, %v1772_v38  ;;  %v4364_v37 = vpack.c.bf16 %v3873_v33, %v3872_v31 }
 0xe70   :  { %v1773_v39 = vadd.f32 %v1771_v30, %v1767_v2  ;;  %v4360_v30 = vpack.c.bf16 %v3871_v29, %v3870_v50 }
 0xe72   :  { %4164 = vmatmul.mubr.msk.f32.vlgmr.msra.gmra.mrb[20].mxu0 %vm123_vm0, %v1773_v39  ;;  %4361 = vmatprep.subr.bf16.mxu0 %v4360_v30 }
 0xe73   :  { %4363 = vmatpush3.bf16.msra.mxu0 %v4360_v30 }
 0xe74   :  { %4365 = vmatprep.subr.bf16.mxu0 %v4364_v37 }
 0xe77   :  { %4367 = vmatpush3.bf16.msra.mxu0 %v4364_v37 }
 0xe78   :  { %4196 = vmatprep.subr.mxu0 %v4541_v21 }
 0xf45   :  { %v4165_v44 = vpop.f32.mrb[20].mxu0 }
 0xf46   :  { %v1860_v57 = vadd.f32 %v4165_v44, %v1781_v56  ;;  %v1854_v58 = vpop.f32.mrb[21].mxu0 }
 0xf47   :  { %v1855_v60 = vadd.f32 %v1854_v58, %v1781_v56 }
 0xf48   :  { %4460 = verf.f32 %v1860_v57  ;;  %v1864_v9 = vmul.f32 0.70710677, %v1860_v57 }
 0xf49   :  { %4462 = verf.f32 %v1855_v60  ;;  %v1863_v7 = vmul.f32 0.70710677, %v1855_v60 }
 0xf52   :  { %v4461_v4 = vpop.eup %4460 }
 0xf53   :  { %v4463_v5 = vpop.eup %4462  ;;  %v1868_v6 = vadd.f32 1.0, %v4461_v4 }
 0xf54   :  { %v1867_v8 = vadd.f32 1.0, %v4463_v5 }
 0xf55   :  { %v1870_v0 = vmul.f32 %v1868_v6, %v1864_v9 }
 0xf56   :  { %v1869_v1 = vmul.f32 %v1867_v8, %v1863_v7 }
 0xf58   :  { %4182 = vmatprep.mubr.msk.f32.mxu1 %vm1879_vm5, %v1869_v1 }
 0xf59   :  { %4183 = vmatmul.mubr.msk.f32.vlgmr.msra.gmra.mrb[18].mxu1 %vm1879_vm5, %v1870_v0 }
 0xf5a   :  { %4208 = vmatprep.mubr.msk.f32.mxu1 %vm4540_vm1, %v4541_v21 }
0x102c   :  { %v4184_v12 = vpop.f32.mrb[18].mxu1 }
0x102d   :  { %v1962_v13 = vadd.f32 %v4184_v12, %v4863_v63  ;;  %v1952_v49 = vpop.f32.mrb[19].mxu1 }
0x102e   :  { %v1961_v14 = vadd.f32 %v1952_v49, %v4865_v3 }
0x102f   :  { %v4936_v15 = vadd.f32 %v1966_v11, %v1962_v13 }
0x1030   :  { %v4938_v16 = vadd.f32 %v1966_v11, %v1961_v14 }
0x1031   :  { %v1974_v17 = vsel %vm123_vm0, %v4936_v15, 0.0 }
0x1032   :  { %1975 = vadd.xlane.f32.xlu1 %v1974_v17  ;;  %v1971_v18 = vsel %vm123_vm0, %v4938_v16, 0.0 }
0x1033   :  { %1972 = vadd.xlane.f32.xlu0 %v1971_v18 }
0x10bf   :  { %v1976_v19 = vpop.xlane.xlu1 %1975 }
0x10c0   :  { %v1978_v35 = vmul.f32 0.03125, %v1976_v19  ;;  %v1973_v20 = vpop.xlane.xlu0 %1972 }
0x10c1   :  { %v1977_v22 = vmul.f32 0.03125, %v1973_v20 }
0x10c2   :  { %v1980_v63 = vsub.f32 %v4936_v15, %v1978_v35 }
0x10c3   :  { %v1979_v3 = vsub.f32 %v4938_v16, %v1977_v22 }
0x10c4   :  { %v1982_v23 = vmul.f32 %v1980_v63, %v1980_v63 }
0x10c5   :  { %v1981_v24 = vmul.f32 %v1979_v3, %v1979_v3 }
0x10c6   :  { %v1986_v25 = vsel %vm123_vm0, %v1982_v23, 0.0 }
0x10c7   :  { %1987 = vadd.xlane.f32.xlu1 %v1986_v25  ;;  %v1983_v28 = vsel %vm123_vm0, %v1981_v24, 0.0 }
0x10c8   :  { %1984 = vadd.xlane.f32.xlu0 %v1983_v28 }
0x10d8   :  { %2095 = vrot.lane.b32.xlu1 %v4685_v59, %s4542_s10 }
0x1154   :  { %v1988_v59 = vpop.xlane.xlu1 %1987 }
0x1155   :  { %v1990_v38 = vmul.f32 0.03125, %v1988_v59  ;;  %v1985_v2 = vpop.xlane.xlu0 %1984 }
0x1156   :  { %v1989_v39 = vmul.f32 0.03125, %v1985_v2 }
0x1157   :  { %v1992_v40 = vadd.f32 1e-05, %v1990_v38 }
0x1158   :  { %v1991_v41 = vadd.f32 1e-05, %v1989_v39  ;;  %v2096_v58 = vpop.permute.xlu1 %2095 }
0x1159   :  { %4464 = vrsqrt.f32 %v1992_v40 }
0x115a   :  { %4466 = vrsqrt.f32 %v1991_v41 }
0x1163   :  { %v4465_v46 = vpop.eup %4464 }
0x1164   :  { %v4467_v47 = vpop.eup %4466  ;;  %v1996_v48 = vmul.f32 %v4465_v46, %v1980_v63 }
0x1165   :  { %v1995_v51 = vmul.f32 %v4467_v47, %v1979_v3 }
0x1166   :  { %v2002_v62 = vmul.f32 %v2000_v45, %v1996_v48 }
0x1167   :  { %v2001_v53 = vmul.f32 %v2000_v45, %v1995_v51 }
0x1168   :  { %v2008_v56 = vadd.f32 %v2006_v52, %v2002_v62 }
0x1169   :  { %v2007_v54 = vadd.f32 %v2006_v52, %v2001_v53 }
0x116b   :  { %4193 = vmatprep.mubr.msk.f32.mxu0 %vm123_vm0, %v2007_v54 }
0x116c   :  { %4194 = vmatmul.mubr.msk.f32.vlgmr.msra.gmra.mrb[22].mxu0 %vm123_vm0, %v2008_v56 }
0x116d   :  { %4198 = vmatprep.mubr.msk.f32.mxu0 %vm4540_vm1, %v4541_v21 }
0x123f   :  { %v4976_v44 = vpop.f32.mrb[22].mxu0 }
0x1240   :  { %2182 = vrot.lane.b32.xlu1 %v4976_v44, %s4542_s10  ;;  %v4980_v57 = vpop.f32.mrb[23].mxu0 }
0x1241   :  { %2104 = vrot.lane.b32.xlu0 %v4980_v57, %s4542_s10  ;;  %v4988_v5 = vadd.f32 %v2096_v58, %v4980_v57 }
0x1244   :  { %2097 = vrot.lane.b32.xlu1 %v4689_v61, %s4542_s10 }
0x12b2   :  { %v2183_v60 = vpop.permute.xlu1 %2182 }
0x12b3   :  { %v2105_v4 = vpop.permute.xlu0 %2104 }
0x12b4   :  { %4197 = vmatpush3.xpose.msk.msra.mxu0 %vm286_vm3, %v2105_v4 }
0x12b5   :  { %4201 = vmatprep.subr.mxu0 %v4541_v21 }
0x12b6   :  { %v2098_v6 = vpop.permute.xlu1 %2097 }
0x12b7   :  { %4199 = vmatmul.mubr.msk.f32.vlgmr.msra.gmra.mrb[24].mxu0 %vm286_vm3, %v4988_v5  ;;  %v4997_v61 = vadd.f32 %v4976_v44, %v2098_v6 }
0x12b8   :  { %4202 = vmatpush3.xpose.msk.msra.mxu0 %vm286_vm3, %v2183_v60  ;;  %4203 = vmatprep.mubr.msk.f32.mxu0 %vm4540_vm1, %v4541_v21 }
0x12b9   :  { %4211 = vmatprep.subr.mxu0 %v4541_v21 }
0x12bb   :  { %4204 = vmatmul.mubr.msk.f32.vlgmr.msra.gmra.mrb[26].mxu0 %vm286_vm3, %v4997_v61 }
0x12bc   :  { %4213 = vmatprep.mubr.msk.f32.mxu0 %vm4540_vm1, %v4541_v21 }
0x138a   :  { %v2177_v7 = vpop.f32.mrb[24].mxu0 }
0x138b   :  { %v2259_v8 = vmul.f32 0.35355338, %v2177_v7  ;;  %v4200_v9 = vpop.f32.mrb[25].mxu0 }
0x138d   :  { %v2261_v1 = vsel %vm286_vm3, %v2259_v8, -inf }
0x138e   :  { %2262 = vmax.xlane.f32.xlu0 %v2261_v1  ;;  %v2255_v0 = vpop.f32.mrb[26].mxu0 }
0x138f   :  { %v2260_v11 = vmul.f32 0.35355338, %v2255_v0  ;;  %v4205_v12 = vpop.f32.mrb[27].mxu0 }
0x1391   :  { %v2264_v13 = vsel %vm286_vm3, %v2260_v11, -inf }
0x1392   :  { %2265 = vmax.xlane.f32.xlu1 %v2264_v13 }
0x13a3   :  { %2359 = vrot.lane.b32.xlu1 %v4976_v44, %s4544_s11 }
0x13a4   :  { %2283 = vrot.lane.b32.xlu0 %v4980_v57, %s4544_s11 }
0x13a7   :  { %2437 = vrot.lane.b32.xlu1 %v4980_v57, %s4545_s12 }
0x13ab   :  { %2515 = vrot.lane.b32.xlu1 %v4976_v44, %s4545_s12 }
0x13af   :  { %2513 = vrot.lane.b32.xlu1 %v4997_v61, %s4546_s13 }
0x141b   :  { %v2263_v49 = vpop.xlane.xlu0 %2262 }
0x141c   :  { %v2267_v14 = vsub.f32 %v2259_v8, %v2263_v49 }
0x141e   :  { %v2269_v17 = vmul.f32 1.442695, %v2267_v14 }
0x141f   :  { %v2284_v18 = vpop.permute.xlu0 %2283  ;;  %v2266_v19 = vpop.xlane.xlu1 %2265 }
0x1420   :  { %4468 = vpow2.f32 %v2269_v17  ;;  %v2268_v35 = vsub.f32 %v2260_v11, %v2266_v19  ;;  %4207 = vmatpush3.msra.mxu1 %v2284_v18 }
0x1421   :  { %4216 = vmatprep.subr.mxu1 %v4541_v21 }
0x1422   :  { %v2271_v20 = vmul.f32 1.442695, %v2268_v35 }
0x1423   :  { %v2360_v22 = vpop.permute.xlu1 %2359 }
0x1424   :  { %4470 = vpow2.f32 %v2271_v20  ;;  %4212 = vmatpush3.msra.mxu0 %v2360_v22 }
0x1425   :  { %4221 = vmatprep.subr.mxu0 %v4541_v21 }
0x1427   :  { %v2438_v50 = vpop.permute.xlu1 %2437 }
0x142a   :  { %v4469_v63 = vpop.eup %4468 }
0x142b   :  { %v2273_v3 = vsel %vm286_vm3, %v4469_v63, 0.0  ;;  %v2516_v33 = vpop.permute.xlu1 %2515 }
0x142c   :  { %2274 = vadd.xlane.f32.xlu0 %v2273_v3 }
0x142e   :  { %v4471_v23 = vpop.eup %4470 }
0x142f   :  { %v2276_v24 = vsel %vm286_vm3, %v4471_v23, 0.0  ;;  %v2514_v38 = vpop.permute.xlu1 %2513 }
0x1430   :  { %2277 = vadd.xlane.f32.xlu0 %v2276_v24 }
0x1446   :  { %2435 = vrot.lane.b32.xlu0 %v4988_v5, %s4546_s13 }
0x14b9   :  { %v2275_v25 = vpop.xlane.xlu0 %2274 }
0x14ba   :  { %4472 = vrcp.f32 %v2275_v25 }
0x14bd   :  { %v2278_v28 = vpop.xlane.xlu0 %2277 }
0x14be   :  { %4474 = vrcp.f32 %v2278_v28 }
0x14c1   :  { %v2436_v59 = vpop.permute.xlu0 %2435 }
0x14c4   :  { %v4473_v29 = vpop.eup %4472 }
0x14c5   :  { %v2281_v30 = vmul.f32 %v4473_v29, %v4469_v63 }
0x14c7   :  { %4209 = vmatmul.mubr.msk.f32.vlgmr.msra.gmra.mrb[20].mxu1 %vm286_vm3, %v2281_v30 }
0x14c8   :  { %v4475_v31 = vpop.eup %4474  ;;  %4217 = vmatpush3.xpose.msk.msra.mxu1 %vm286_vm3, %v2438_v50  ;;  %4218 = vmatprep.mubr.msk.f32.mxu1 %vm4540_vm1, %v4541_v21 }
0x14c9   :  { %v2282_v37 = vmul.f32 %v4475_v31, %v4471_v23  ;;  %4226 = vmatprep.subr.mxu1 %v4541_v21 }
0x14cb   :  { %4214 = vmatmul.mubr.msk.f32.vlgmr.msra.gmra.mrb[28].mxu0 %vm286_vm3, %v2282_v37  ;;  %4219 = vmatmul.mubr.msk.f32.vlgmr.msra.gmra.mrb[22].mxu1 %vm286_vm3, %v2436_v59 }
0x14cc   :  { %4222 = vmatpush3.xpose.msk.msra.mxu0 %vm286_vm3, %v2516_v33  ;;  %4223 = vmatprep.mubr.msk.f32.mxu0 %vm4540_vm1, %v4541_v21 }
0x14cd   :  { %4231 = vmatprep.subr.mxu0 %v4541_v21  ;;  %4228 = vmatprep.mubr.msk.f32.mxu1 %vm4540_vm1, %v4541_v21 }
0x14cf   :  { %4224 = vmatmul.mubr.msk.f32.vlgmr.msra.gmra.mrb[30].mxu0 %vm286_vm3, %v2514_v38 }
0x14d0   :  { %4233 = vmatprep.mubr.msk.f32.mxu0 %vm4540_vm1, %v4541_v21 }
0x159a   :  { %v5038_v2 = vpop.f32.mrb[20].mxu1 }
0x159b   :  { %v4210_v39 = vpop.f32.mrb[21].mxu1 }
0x159e   :  { %v5040_v40 = vpop.f32.mrb[28].mxu0  ;;  %v2509_v41 = vpop.f32.mrb[22].mxu1 }
0x159f   :  { %v2591_v45 = vmul.f32 0.35355338, %v2509_v41  ;;  %v4215_v46 = vpop.f32.mrb[29].mxu0  ;;  %v4220_v47 = vpop.f32.mrb[23].mxu1 }
0x15a1   :  { %v2593_v48 = vsel %vm286_vm3, %v2591_v45, -inf }
0x15a2   :  { %2594 = vmax.xlane.f32.xlu0 %v2593_v48  ;;  %v2587_v51 = vpop.f32.mrb[30].mxu0 }
0x15a3   :  { %v2592_v52 = vmul.f32 0.35355338, %v2587_v51  ;;  %v4225_v62 = vpop.f32.mrb[31].mxu0 }
0x15a5   :  { %v2596_v53 = vsel %vm286_vm3, %v2592_v52, -inf }
0x15a6   :  { %2597 = vmax.xlane.f32.xlu1 %v2596_v53 }
0x15b7   :  { %2691 = vrot.lane.b32.xlu1 %v4976_v44, %s4547_s14 }
0x15b8   :  { %2615 = vrot.lane.b32.xlu0 %v4980_v57, %s4547_s14 }
0x15bb   :  { %2769 = vrot.lane.b32.xlu1 %v4980_v57, %s4548_s15 }
0x15bf   :  { %2847 = vrot.lane.b32.xlu1 %v4976_v44, %s4548_s15 }
0x15c3   :  { %2845 = vrot.lane.b32.xlu1 %v4997_v61, %s4549_s17 }
0x162f   :  { %v2595_v54 = vpop.xlane.xlu0 %2594 }
0x1630   :  { %v2599_v56 = vsub.f32 %v2591_v45, %v2595_v54 }
0x1632   :  { %v2601_v58 = vmul.f32 1.442695, %v2599_v56 }
0x1633   :  { %v2616_v60 = vpop.permute.xlu0 %2615  ;;  %v2598_v4 = vpop.xlane.xlu1 %2597 }
0x1634   :  { %4476 = vpow2.f32 %v2601_v58  ;;  %v2600_v6 = vsub.f32 %v2592_v52, %v2598_v4  ;;  %4227 = vmatpush3.msra.mxu1 %v2616_v60 }
0x1635   :  { %4236 = vmatprep.subr.mxu1 %v4541_v21 }
0x1636   :  { %v2603_v7 = vmul.f32 1.442695, %v2600_v6 }
0x1637   :  { %v2692_v8 = vpop.permute.xlu1 %2691 }
0x1638   :  { %4478 = vpow2.f32 %v2603_v7  ;;  %4232 = vmatpush3.msra.mxu0 %v2692_v8 }
0x1639   :  { %4241 = vmatprep.subr.mxu0 %v4541_v21 }
0x163b   :  { %v2770_v49 = vpop.permute.xlu1 %2769 }
0x163e   :  { %v4477_v9 = vpop.eup %4476 }
0x163f   :  { %v2605_v1 = vsel %vm286_vm3, %v4477_v9, 0.0  ;;  %v2848_v19 = vpop.permute.xlu1 %2847 }
0x1640   :  { %2606 = vadd.xlane.f32.xlu0 %v2605_v1 }
0x1642   :  { %v4479_v0 = vpop.eup %4478 }
0x1643   :  { %v2608_v11 = vsel %vm286_vm3, %v4479_v0, 0.0  ;;  %v2846_v22 = vpop.permute.xlu1 %2845 }
0x1644   :  { %2609 = vadd.xlane.f32.xlu0 %v2608_v11 }
0x165a   :  { %2767 = vrot.lane.b32.xlu0 %v4988_v5, %s4549_s17 }
0x16cd   :  { %v2607_v12 = vpop.xlane.xlu0 %2606 }
0x16ce   :  { %4480 = vrcp.f32 %v2607_v12 }
0x16d1   :  { %v2610_v13 = vpop.xlane.xlu0 %2609 }
0x16d2   :  { %4482 = vrcp.f32 %v2610_v13 }
0x16d5   :  { %v2768_v20 = vpop.permute.xlu0 %2767 }
0x16d8   :  { %v4481_v14 = vpop.eup %4480 }
0x16d9   :  { %v2613_v17 = vmul.f32 %v4481_v14, %v4477_v9 }
0x16db   :  { %4229 = vmatmul.mubr.msk.f32.vlgmr.msra.gmra.mrb[24].mxu1 %vm286_vm3, %v2613_v17 }
0x16dc   :  { %v4483_v18 = vpop.eup %4482  ;;  %4237 = vmatpush3.xpose.msk.msra.mxu1 %vm286_vm3, %v2770_v49  ;;  %4238 = vmatprep.mubr.msk.f32.mxu1 %vm4540_vm1, %v4541_v21 }
0x16dd   :  { %v2614_v35 = vmul.f32 %v4483_v18, %v4479_v0  ;;  %4246 = vmatprep.subr.mxu1 %v4541_v21 }
0x16df   :  { %4234 = vmatmul.mubr.msk.f32.vlgmr.msra.gmra.mrb[32].mxu0 %vm286_vm3, %v2614_v35  ;;  %4239 = vmatmul.mubr.msk.f32.vlgmr.msra.gmra.mrb[26].mxu1 %vm286_vm3, %v2768_v20 }
0x16e0   :  { %4242 = vmatpush3.xpose.msk.msra.mxu0 %vm286_vm3, %v2848_v19  ;;  %4243 = vmatprep.mubr.msk.f32.mxu0 %vm4540_vm1, %v4541_v21 }
0x16e1   :  { %4251 = vmatprep.subr.mxu0 %v4541_v21  ;;  %4248 = vmatprep.mubr.msk.f32.mxu1 %vm4540_vm1, %v4541_v21 }
0x16e3   :  { %4244 = vmatmul.mubr.msk.f32.vlgmr.msra.gmra.mrb[34].mxu0 %vm286_vm3, %v2846_v22 }
0x16e4   :  { %4253 = vmatprep.mubr.msk.f32.mxu0 %vm4540_vm1, %v4541_v21 }
0x17ae   :  { %v5076_v63 = vpop.f32.mrb[24].mxu1 }
0x17af   :  { %v4230_v3 = vpop.f32.mrb[25].mxu1 }
0x17b2   :  { %v5078_v23 = vpop.f32.mrb[32].mxu0  ;;  %v2841_v24 = vpop.f32.mrb[26].mxu1 }
0x17b3   :  { %v2923_v25 = vmul.f32 0.35355338, %v2841_v24  ;;  %v4235_v28 = vpop.f32.mrb[33].mxu0  ;;  %v4240_v50 = vpop.f32.mrb[27].mxu1 }
0x17b5   :  { %v2925_v29 = vsel %vm286_vm3, %v2923_v25, -inf }
0x17b6   :  { %2926 = vmax.xlane.f32.xlu0 %v2925_v29  ;;  %v2919_v30 = vpop.f32.mrb[34].mxu0 }
0x17b7   :  { %v2924_v31 = vmul.f32 0.35355338, %v2919_v30  ;;  %v4245_v33 = vpop.f32.mrb[35].mxu0 }
0x17b9   :  { %v2928_v37 = vsel %vm286_vm3, %v2924_v31, -inf }
0x17ba   :  { %2929 = vmax.xlane.f32.xlu1 %v2928_v37 }
0x17cb   :  { %3023 = vrot.lane.b32.xlu1 %v4976_v44, %s4550_s18 }
0x17cc   :  { %2947 = vrot.lane.b32.xlu0 %v4980_v57, %s4550_s18 }
0x17cf   :  { %3101 = vrot.lane.b32.xlu1 %v4980_v57, %s4551_s19 }
0x17d3   :  { %3179 = vrot.lane.b32.xlu1 %v4976_v44, %s4551_s19 }
0x17d7   :  { %3177 = vrot.lane.b32.xlu1 %v4997_v61, %s4552_s20 }
0x1843   :  { %v2927_v59 = vpop.xlane.xlu0 %2926 }
0x1844   :  { %v2931_v38 = vsub.f32 %v2923_v25, %v2927_v59 }
0x1846   :  { %v2933_v39 = vmul.f32 1.442695, %v2931_v38 }
0x1847   :  { %v2948_v41 = vpop.permute.xlu0 %2947  ;;  %v2930_v45 = vpop.xlane.xlu1 %2929 }
0x1848   :  { %4484 = vpow2.f32 %v2933_v39  ;;  %v2932_v46 = vsub.f32 %v2924_v31, %v2930_v45  ;;  %4247 = vmatpush3.msra.mxu1 %v2948_v41  ;;  %v3901_v39 = vld [vmem:[%s5246_s4 + $0x28] sm:$0xff]  ;;  %v3902_v45 = vld [vmem:[%s5246_s4 + $0x30] sm:$0xff] }
0x1849   :  { %4256 = vmatprep.subr.mxu1 %v4541_v21 }
0x184a   :  { %v2935_v47 = vmul.f32 1.442695, %v2932_v46  ;;  %v3903_v46 = vld [vmem:[%s5246_s4 + $0x38] sm:$0xff] }
0x184b   :  { %v3024_v48 = vpop.permute.xlu1 %3023 }
0x184c   :  { %4486 = vpow2.f32 %v2935_v47  ;;  %4252 = vmatpush3.msra.mxu0 %v3024_v48  ;;  %v4372_v47 = vpack.c.bf16 %v3903_v46, %v3902_v45 }
0x184d   :  { %4261 = vmatprep.subr.mxu0 %v4541_v21 }
0x184f   :  { %v3102_v56 = vpop.permute.xlu1 %3101 }
0x1852   :  { %v4485_v51 = vpop.eup %4484 }
0x1853   :  { %v2937_v52 = vsel %vm286_vm3, %v4485_v51, 0.0  ;;  %v3180_v6 = vpop.permute.xlu1 %3179 }
0x1854   :  { %2938 = vadd.xlane.f32.xlu0 %v2937_v52 }
0x1856   :  { %v4487_v61 = vpop.eup %4486 }
0x1857   :  { %v2940_v62 = vsel %vm286_vm3, %v4487_v61, 0.0  ;;  %v3178_v8 = vpop.permute.xlu1 %3177 }
0x1858   :  { %2941 = vadd.xlane.f32.xlu0 %v2940_v62 }
0x186e   :  { %3099 = vrot.lane.b32.xlu0 %v4988_v5, %s4552_s20 }
0x18e1   :  { %v2939_v53 = vpop.xlane.xlu0 %2938 }
0x18e2   :  { %4488 = vrcp.f32 %v2939_v53 }
0x18e5   :  { %v2942_v54 = vpop.xlane.xlu0 %2941 }
0x18e6   :  { %4490 = vrcp.f32 %v2942_v54 }
0x18e9   :  { %v3100_v5 = vpop.permute.xlu0 %3099 }
0x18ec   :  { %v4489_v58 = vpop.eup %4488 }
0x18ed   :  { %v2945_v60 = vmul.f32 %v4489_v58, %v4485_v51 }
0x18ef   :  { %4249 = vmatmul.mubr.msk.f32.vlgmr.msra.gmra.mrb[28].mxu1 %vm286_vm3, %v2945_v60 }
0x18f0   :  { %v4491_v4 = vpop.eup %4490  ;;  %4257 = vmatpush3.xpose.msk.msra.mxu1 %vm286_vm3, %v3102_v56  ;;  %4258 = vmatprep.mubr.msk.f32.mxu1 %vm4540_vm1, %v4541_v21 }
0x18f1   :  { %v2946_v7 = vmul.f32 %v4491_v4, %v4487_v61  ;;  %4266 = vmatprep.subr.mxu1 %v4541_v21 }
0x18f3   :  { %4254 = vmatmul.mubr.msk.f32.vlgmr.msra.gmra.mrb[36].mxu0 %vm286_vm3, %v2946_v7  ;;  %4259 = vmatmul.mubr.msk.f32.vlgmr.msra.gmra.mrb[30].mxu1 %vm286_vm3, %v3100_v5 }
0x18f4   :  { %4262 = vmatpush3.xpose.msk.msra.mxu0 %vm286_vm3, %v3180_v6  ;;  %4263 = vmatprep.mubr.msk.f32.mxu0 %vm4540_vm1, %v4541_v21 }
0x18f5   :  { %4271 = vmatprep.subr.mxu0 %v4541_v21  ;;  %4268 = vmatprep.mubr.msk.f32.mxu1 %vm4540_vm1, %v4541_v21 }
0x18f7   :  { %4264 = vmatmul.mubr.msk.f32.vlgmr.msra.gmra.mrb[38].mxu0 %vm286_vm3, %v3178_v8 }
0x18f8   :  { %4273 = vmatprep.mubr.msk.f32.mxu0 %vm4540_vm1, %v4541_v21 }
0x19c2   :  { %v3019_v9 = vpop.f32.mrb[28].mxu1 }
0x19c3   :  { %v4250_v1 = vpop.f32.mrb[29].mxu1 }
0x19c6   :  { %v3095_v0 = vpop.f32.mrb[36].mxu0  ;;  %v3173_v11 = vpop.f32.mrb[30].mxu1 }
0x19c7   :  { %v3255_v12 = vmul.f32 0.35355338, %v3173_v11  ;;  %v4255_v13 = vpop.f32.mrb[37].mxu0  ;;  %v4260_v49 = vpop.f32.mrb[31].mxu1 }
0x19c9   :  { %v3257_v14 = vsel %vm286_vm3, %v3255_v12, -inf }
0x19ca   :  { %3258 = vmax.xlane.f32.xlu0 %v3257_v14  ;;  %v3251_v17 = vpop.f32.mrb[38].mxu0 }
0x19cb   :  { %v3256_v18 = vmul.f32 0.35355338, %v3251_v17  ;;  %v4265_v19 = vpop.f32.mrb[39].mxu0 }
0x19cd   :  { %v3260_v35 = vsel %vm286_vm3, %v3256_v18, -inf }
0x19ce   :  { %3261 = vmax.xlane.f32.xlu1 %v3260_v35 }
0x19df   :  { %3355 = vrot.lane.b32.xlu1 %v4976_v44, %s4553_s21 }
0x19e3   :  { %3433 = vrot.lane.b32.xlu1 %v5076_v63, %s4538_s16 }
0x19e7   :  { %3435 = vrot.lane.b32.xlu1 %v5078_v23, %s4538_s16 }
0x19eb   :  { %3443 = vrot.lane.b32.xlu1 %v3095_v0, %s4554_s22 }
0x1a57   :  { %v3259_v21 = vpop.xlane.xlu0 %3258 }
0x1a58   :  { %v3263_v20 = vsub.f32 %v3255_v12, %v3259_v21 }
0x1a5a   :  { %v3265_v22 = vmul.f32 1.442695, %v3263_v20 }
0x1a5b   :  { %v3262_v3 = vpop.xlane.xlu1 %3261 }
0x1a5c   :  { %4492 = vpow2.f32 %v3265_v22  ;;  %v3264_v24 = vsub.f32 %v3256_v18, %v3262_v3  ;;  %v3906_v3 = vld [vmem:[%s5247_s5 + $0x20] sm:$0xff] }
0x1a5e   :  { %v3267_v25 = vmul.f32 1.442695, %v3264_v24  ;;  %v3907_v24 = vld [vmem:[%s5247_s5 + $0x28] sm:$0xff] }
0x1a5f   :  { %v3356_v28 = vpop.permute.xlu1 %3355 }
0x1a60   :  { %4494 = vpow2.f32 %v3267_v25  ;;  %4272 = vmatpush3.msra.mxu0 %v3356_v28  ;;  %v4376_v25 = vpack.c.bf16 %v3907_v24, %v3906_v3  ;;  %v3908_v28 = vld [vmem:[%s5247_s5 + $0x30] sm:$0xff] }
0x1a62   :  { %4377 = vmatprep.subr.bf16.mxu0 %v4376_v25 }
0x1a63   :  { %v3434_v62 = vpop.permute.xlu1 %3433 }
0x1a64   :  { %v3455_v56 = vsel %vm286_vm3, %v5038_v2, %v3434_v62  ;;  %v3552_v2 = vrot.slane %v4966_v43, %v1732_v42 }
0x1a66   :  { %v4493_v50 = vpop.eup %4492 }
0x1a67   :  { %v3269_v44 = vsel %vm286_vm3, %v4493_v50, 0.0  ;;  %v3436_v53 = vpop.permute.xlu1 %3435 }
0x1a68   :  { %3270 = vadd.xlane.f32.xlu0 %v3269_v44  ;;  %v3456_v7 = vsel %vm286_vm3, %v5040_v40, %v3436_v53  ;;  %v3916_v53 = vld [vmem:[%s5248_s6 + $0x60] sm:$0xff] }
0x1a6a   :  { %v4495_v63 = vpop.eup %4494 }
0x1a6b   :  { %v3272_v29 = vsel %vm286_vm3, %v4495_v63, 0.0  ;;  %v3444_v58 = vpop.permute.xlu1 %3443 }
0x1a6c   :  { %3273 = vadd.xlane.f32.xlu0 %v3272_v29  ;;  %v3458_v5 = vsel %vm48_vm2, %v3456_v7, %v3444_v58  ;;  %v3918_v58 = vld [vmem:[%s5248_s6 + $0x70] sm:$0xff] }
0x1a82   :  { %3279 = vrot.lane.b32.xlu0 %v4980_v57, %s4553_s21  ;;  %v3900_v57 = vld [vmem:[%s5246_s4 + $0x20] sm:$0xff] }
0x1a83   :  { %v4368_v41 = vpack.c.bf16 %v3901_v39, %v3900_v57  ;;  %v3590_v57 = vrot.slane %v4966_v43, %v1770_v27  ;;  %v3914_v27 = vld [vmem:[%s5248_s6 + $0x50] sm:$0xff] }
0x1a86   :  { %3441 = vrot.lane.b32.xlu0 %v3019_v9, %s4554_s22 }
0x1af5   :  { %v3271_v23 = vpop.xlane.xlu0 %3270 }
0x1af6   :  { %4496 = vrcp.f32 %v3271_v23 }
0x1af9   :  { %v3274_v30 = vpop.xlane.xlu0 %3273 }
0x1afa   :  { %4498 = vrcp.f32 %v3274_v30 }
0x1afd   :  { %v3280_v31 = vpop.permute.xlu0 %3279 }
0x1afe   :  { %4267 = vmatpush3.msra.mxu1 %v3280_v31 }
0x1aff   :  { %4369 = vmatprep.subr.bf16.mxu1 %v4368_v41 }
0x1b00   :  { %v4497_v33 = vpop.eup %4496 }
0x1b01   :  { %v3277_v37 = vmul.f32 %v4497_v33, %v4493_v50  ;;  %v3442_v54 = vpop.permute.xlu0 %3441  ;;  %v3909_v50 = vld [vmem:[%s5247_s5 + $0x38] sm:$0xff] }
0x1b02   :  { %v3457_v60 = vsel %vm48_vm2, %v3455_v56, %v3442_v54  ;;  %v4380_v44 = vpack.c.bf16 %v3909_v50, %v3908_v28  ;;  %v3917_v54 = vld [vmem:[%s5248_s6 + $0x68] sm:$0xff] }
0x1b03   :  { %4269 = vmatmul.mubr.msk.f32.vlgmr.msra.gmra.mrb[32].mxu1 %vm286_vm3, %v3277_v37  ;;  %v3584_v37 = vrot.slane %v4966_v43, %v1764_v26  ;;  %v3912_v26 = vld [vmem:[%s5248_s6 + $0x40] sm:$0xff]  ;;  %v4392_v56 = vpack.c.bf16 %v3917_v54, %v3916_v53 }
0x1b04   :  { %v4499_v59 = vpop.eup %4498  ;;  %4371 = vmatpush3.bf16.msra.mxu1 %v4368_v41 }
0x1b05   :  { %v3278_v38 = vmul.f32 %v4499_v59, %v4495_v63  ;;  %4373 = vmatprep.subr.bf16.mxu1 %v4372_v47 }
0x1b07   :  { %4274 = vmatmul.mubr.msk.f32.vlgmr.msra.gmra.mrb[40].mxu0 %vm286_vm3, %v3278_v38 }
0x1b08   :  { %4375 = vmatpush3.bf16.msra.mxu1 %v4372_v47  ;;  %4379 = vmatpush3.bf16.msra.mxu0 %v4376_v25 }
0x1b09   :  { %4381 = vmatprep.subr.bf16.mxu0 %v4380_v44 }
0x1b0c   :  { %4383 = vmatpush3.bf16.msra.mxu0 %v4380_v44 }
0x1bd6   :  { %v3351_v48 = vpop.f32.mrb[32].mxu1 }
0x1bd7   :  { %3449 = vrot.lane.b32.xlu0 %v3351_v48, %s4555_s29  ;;  %v4270_v51 = vpop.f32.mrb[33].mxu1 }
0x1bd8   :  { %v3913_v51 = vld [vmem:[%s5248_s6 + $0x48] sm:$0xff] }
0x1bda   :  { %v3427_v52 = vpop.f32.mrb[40].mxu0 }
0x1bdb   :  { %3451 = vrot.lane.b32.xlu1 %v3427_v52, %s4555_s29  ;;  %v4275_v61 = vpop.f32.mrb[41].mxu0  ;;  %v4384_v52 = vpack.c.bf16 %v3913_v51, %v3912_v26 }
0x1bdc   :  { %v3915_v61 = vld [vmem:[%s5248_s6 + $0x58] sm:$0xff] }
0x1bdd   :  { %4385 = vmatprep.subr.bf16.mxu1 %v4384_v52  ;;  %v4388_v62 = vpack.c.bf16 %v3915_v61, %v3914_v27 }
0x1c49   :  { %v3450_v4 = vpop.permute.xlu0 %3449 }
0x1c4a   :  { %v3459_v6 = vsel %vm1640_vm4, %v3457_v60, %v3450_v4  ;;  %v3919_v60 = vld [vmem:[%s5248_s6 + $0x78] sm:$0xff] }
0x1c4b   :  { %4284 = vmatprep.mubr.msk.f32.mxu1 %vm123_vm0, %v3459_v6  ;;  %v4396_v4 = vpack.c.bf16 %v3919_v60, %v3918_v58  ;;  %v3601_v6 = vrot.slane %v4966_v43, %v1780_v55  ;;  %v3786_v55 = vrot.slane %v4966_v43, %v1965_v10 }
0x1c4d   :  { %v3452_v8 = vpop.permute.xlu1 %3451 }
0x1c4e   :  { %v3460_v9 = vsel %vm1640_vm4, %v3458_v5, %v3452_v8 }
0x1c4f   :  { %4285 = vmatmul.mubr.msk.f32.vlgmr.msra.gmra.mrb[34].mxu1 %vm123_vm0, %v3460_v9 }
0x1c50   :  { %4387 = vmatpush3.bf16.msra.mxu1 %v4384_v52 }
0x1c51   :  { %4389 = vmatprep.subr.bf16.mxu1 %v4388_v62 }
0x1c54   :  { %4391 = vmatpush3.bf16.msra.mxu1 %v4388_v62 }
0x1c55   :  { %4393 = vmatprep.subr.bf16.mxu1 %v4392_v56 }
0x1c58   :  { %4395 = vmatpush3.bf16.msra.mxu1 %v4392_v56 }
0x1c59   :  { %4397 = vmatprep.subr.bf16.mxu1 %v4396_v4 }
0x1c5c   :  { %4399 = vmatpush3.bf16.msra.mxu1 %v4396_v4 }
0x1d22   :  { %v4286_v1 = vpop.f32.mrb[34].mxu1 }
0x1d23   :  { %v3548_v0 = vadd.f32 %v4286_v1, %v4936_v15  ;;  %v3538_v11 = vpop.f32.mrb[35].mxu1 }
0x1d24   :  { %v3547_v12 = vadd.f32 %v3538_v11, %v4938_v16 }
0x1d25   :  { %v5159_v13 = vadd.f32 %v3552_v2, %v3548_v0 }
0x1d26   :  { %v5161_v40 = vadd.f32 %v3552_v2, %v3547_v12 }
0x1d27   :  { %v3558_v49 = vsel %vm123_vm0, %v5159_v13, 0.0 }
0x1d28   :  { %3559 = vadd.xlane.f32.xlu1 %v3558_v49  ;;  %v3555_v14 = vsel %vm123_vm0, %v5161_v40, 0.0 }
0x1d29   :  { %3556 = vadd.xlane.f32.xlu0 %v3555_v14 }
0x1db5   :  { %v3560_v17 = vpop.xlane.xlu1 %3559 }
0x1db6   :  { %v3562_v42 = vmul.f32 0.03125, %v3560_v17  ;;  %v3557_v18 = vpop.xlane.xlu0 %3556 }
0x1db7   :  { %v3561_v19 = vmul.f32 0.03125, %v3557_v18 }
0x1db8   :  { %v3564_v15 = vsub.f32 %v5159_v13, %v3562_v42 }
0x1db9   :  { %v3563_v16 = vsub.f32 %v5161_v40, %v3561_v19 }
0x1dba   :  { %v3566_v20 = vmul.f32 %v3564_v15, %v3564_v15 }
0x1dbb   :  { %v3565_v35 = vmul.f32 %v3563_v16, %v3563_v16 }
0x1dbc   :  { %v3570_v22 = vsel %vm123_vm0, %v3566_v20, 0.0 }
0x1dbd   :  { %v3567_v21 = vsel %vm123_vm0, %v3565_v35, 0.0 }
0x1dbe   :  { %3568 = vadd.xlane.f32.xlu0 %v3567_v21 }
0x1dc2   :  { %3571 = vadd.xlane.f32.xlu0 %v3570_v22 }
0x1e4b   :  { %v3569_v63 = vpop.xlane.xlu0 %3568 }
0x1e4c   :  { %v3573_v29 = vmul.f32 0.03125, %v3569_v63 }
0x1e4e   :  { %v3575_v23 = vadd.f32 1e-05, %v3573_v29 }
0x1e4f   :  { %v3572_v30 = vpop.xlane.xlu0 %3571 }
0x1e50   :  { %4500 = vrsqrt.f32 %v3575_v23  ;;  %v3574_v31 = vmul.f32 0.03125, %v3572_v30 }
0x1e52   :  { %v3576_v33 = vadd.f32 1e-05, %v3574_v31  ;;  %v3922_v31 = vld [vmem:[%s5249_s7 + $0x10] sm:$0xff] }
0x1e54   :  { %4502 = vrsqrt.f32 %v3576_v33  ;;  %v3820_v33 = vrot.slane %v3922_v31, %v4657_v34 }
0x1e5a   :  { %v4501_v59 = vpop.eup %4500 }
0x1e5b   :  { %v3579_v38 = vmul.f32 %v4501_v59, %v3563_v16 }
0x1e5d   :  { %v3585_v39 = vmul.f32 %v3584_v37, %v3579_v38  ;;  %v3826_v38 = vrot.slane %v3922_v31, %v4665_v36 }
0x1e5e   :  { %v4503_v41 = vpop.eup %4502 }
0x1e5f   :  { %v3580_v45 = vmul.f32 %v4503_v41, %v3564_v15  ;;  %v3591_v46 = vadd.f32 %v3590_v57, %v3585_v39 }
0x1e61   :  { %v3586_v47 = vmul.f32 %v3584_v37, %v3580_v45  ;;  %4295 = vmatprep.mubr.msk.f32.mxu0 %vm123_vm0, %v3591_v46 }
0x1e63   :  { %v3592_v48 = vadd.f32 %v3590_v57, %v3586_v47 }
0x1e65   :  { %4296 = vmatmul.mubr.msk.f32.vlgmr.msra.gmra.mrb[42].mxu0 %vm123_vm0, %v3592_v48 }
0x1f38   :  { %v4297_v7 = vpop.f32.mrb[42].mxu0 }
0x1f39   :  { %v3680_v5 = vadd.f32 %v4297_v7, %v3601_v6  ;;  %v3674_v8 = vpop.f32.mrb[43].mxu0 }
0x1f3a   :  { %v3675_v9 = vadd.f32 %v3674_v8, %v3601_v6 }
0x1f3b   :  { %4504 = verf.f32 %v3680_v5  ;;  %v3684_v49 = vmul.f32 0.70710677, %v3680_v5 }
0x1f3c   :  { %4506 = verf.f32 %v3675_v9  ;;  %v3683_v11 = vmul.f32 0.70710677, %v3675_v9 }
0x1f45   :  { %v4505_v2 = vpop.eup %4504 }
0x1f46   :  { %v4507_v1 = vpop.eup %4506  ;;  %v3688_v0 = vadd.f32 1.0, %v4505_v2 }
0x1f47   :  { %v3687_v12 = vadd.f32 1.0, %v4507_v1 }
0x1f48   :  { %v3690_v17 = vmul.f32 %v3688_v0, %v3684_v49 }
0x1f49   :  { %v3689_v14 = vmul.f32 %v3687_v12, %v3683_v11 }
0x1f4b   :  { %4314 = vmatprep.mubr.msk.f32.mxu1 %vm1879_vm5, %v3689_v14 }
0x1f4c   :  { %4315 = vmatmul.mubr.msk.f32.vlgmr.msra.gmra.mrb[36].mxu1 %vm1879_vm5, %v3690_v17 }
0x201f   :  { %v4316_v42 = vpop.f32.mrb[36].mxu1 }
0x2020   :  { %v3782_v18 = vadd.f32 %v4316_v42, %v5159_v13  ;;  %v3772_v19 = vpop.f32.mrb[37].mxu1 }
0x2021   :  { %v3781_v15 = vadd.f32 %v3772_v19, %v5161_v40 }
0x2022   :  { %v3788_v16 = vadd.f32 %v3786_v55, %v3782_v18 }
0x2023   :  { %v3787_v35 = vadd.f32 %v3786_v55, %v3781_v15 }
0x2024   :  { %v3794_v21 = vsel %vm123_vm0, %v3788_v16, 0.0 }
0x2025   :  { %3795 = vadd.xlane.f32.xlu1 %v3794_v21  ;;  %v3791_v20 = vsel %vm123_vm0, %v3787_v35, 0.0 }
0x2026   :  { %3792 = vadd.xlane.f32.xlu0 %v3791_v20 }
0x20b2   :  { %v3796_v22 = vpop.xlane.xlu1 %3795 }
0x20b3   :  { %v3798_v3 = vmul.f32 0.03125, %v3796_v22  ;;  %v3793_v24 = vpop.xlane.xlu0 %3792 }
0x20b4   :  { %v3797_v32 = vmul.f32 0.03125, %v3793_v24 }
0x20b5   :  { %v3800_v25 = vsub.f32 %v3788_v16, %v3798_v3 }
0x20b6   :  { %v3799_v10 = vsub.f32 %v3787_v35, %v3797_v32 }
0x20b7   :  { %v3802_v43 = vmul.f32 %v3800_v25, %v3800_v25 }
0x20b8   :  { %v3801_v28 = vmul.f32 %v3799_v10, %v3799_v10 }
0x20b9   :  { %v3806_v13 = vsel %vm123_vm0, %v3802_v43, 0.0 }
0x20ba   :  { %3807 = vadd.xlane.f32.xlu1 %v3806_v13  ;;  %v3803_v40 = vsel %vm123_vm0, %v3801_v28, 0.0 }
0x20bb   :  { %3804 = vadd.xlane.f32.xlu0 %v3803_v40 }
0x2147   :  { %v3808_v50 = vpop.xlane.xlu1 %3807 }
0x2148   :  { %v3810_v44 = vmul.f32 0.03125, %v3808_v50  ;;  %v3805_v63 = vpop.xlane.xlu0 %3804 }
0x2149   :  { %v3809_v29 = vmul.f32 0.03125, %v3805_v63 }
0x214a   :  { %v3812_v23 = vadd.f32 1e-05, %v3810_v44 }
0x214b   :  { %v3811_v30 = vadd.f32 1e-05, %v3809_v29 }
0x214c   :  { %4508 = vrsqrt.f32 %v3812_v23 }
0x214d   :  { %4510 = vrsqrt.f32 %v3811_v30 }
0x2156   :  { %v4509_v37 = vpop.eup %4508 }
0x2157   :  { %v4511_v59 = vpop.eup %4510  ;;  %v3816_v57 = vmul.f32 %v4509_v37, %v3800_v25 }
0x2158   :  { %v3815_v39 = vmul.f32 %v4511_v59, %v3799_v10 }
0x2159   :  { %v3822_v41 = vmul.f32 %v3820_v33, %v3816_v57 }
0x215a   :  { %v3821_v45 = vmul.f32 %v3820_v33, %v3815_v39 }
0x215b   :  { %v3828_v46 = vadd.f32 %v3826_v38, %v3822_v41 }
0x215c   :  { %v3827_v47 = vadd.f32 %v3826_v38, %v3821_v45 }
0x215d   :  { %3830 = vst.msk [vmem:[%s5250_s8 + $0x8] sm:$0xff] %vm123_vm0, %v3828_v46 }
0x215e   :  { %3829 = vst.msk [vmem:[%s5250_s8] sm:$0xff] %vm123_vm0, %v3827_v47 }
0x215f   :  { %3835 = vsyncpa [#allocation3], 1 }

</bundles_post_ra>
